<compile_context>
chip_gen: v5e
topology: v5e:2x2
jax: 0.10.0
libtpu: 0.0.40
codegen_flags: <defaults>
</compile_context>

<pallas_src>
import functools

import jax
import jax.numpy as jnp
from jax.experimental import pallas as pl
from jax.experimental.pallas import tpu as pltpu


def _wsconv_kernel(x_ref, w_ref, b_ref, o_ref, *, tH, Wo, C, K):
    # x_ref : (1, Hp, Wp, C)         zero-padded input image (one batch element)
    # w_ref : (K*K*C, OCp)  bf16     pre-scaled, channel-padded weight matrix
    # b_ref : (1, OCp)      f32      channel-padded bias
    # o_ref : (1, tH*Wo, OCp) f32    lane-dense output row-tile
    i = pl.program_id(1)
    r0 = pl.multiple_of(i * tH, tH)              # first padded input row of this tile

    # Row band needed by this output tile: (tH + K - 1, Wp, C); cast once to bf16.
    band = x_ref[0, pl.ds(r0, tH + K - 1), :, :].astype(jnp.bfloat16)

    # Build the im2col patch once (column order = (kh, kw, c), matching w_ref).
    # TODO(synk): for large W tiles, replace the per-(kh,kw) slices with
    # pltpu.roll on the sublane axis (XLU slot is idle here) to avoid relayouts.
    cols = []
    for kh in range(K):
        for kw in range(K):
            cols.append(band[kh:kh + tH, kw:kw + Wo, :].reshape(tH * Wo, C))
    patch = jnp.concatenate(cols, axis=-1)       # (tH*Wo, K*K*C) bf16

    # Single MXU matmul with f32 accumulation, then bias, then lane-dense store.
    acc = jnp.dot(patch, w_ref[...], preferred_element_type=jnp.float32)
    acc = acc + b_ref[...]                       # (1, OCp) broadcasts over rows
    o_ref[0] = acc.astype(o_ref.dtype)


def _pick_row_tile(Ho, Wo, Hp, Wp, C, OCp, K, budget_bytes=8 << 20):
    """Largest row tile whose per-step VMEM working set fits a small budget."""
    def footprint(tH):
        x_blk = Hp * Wp * C * 4 * 2              # padded image block, double-buffered (f32)
        band = (tH + K - 1) * Wp * C * 2         # bf16 row band
        patch = tH * Wo * K * K * C * 2          # bf16 im2col patch
        acc = tH * Wo * OCp * 4                  # f32 matmul result
        out_blk = tH * Wo * OCp * 4 * 2          # f32 output tile, double-buffered
        return x_blk + band + patch + acc + out_blk

    if footprint(Ho) <= budget_bytes:
        return Ho                                # whole image per step: fewest grid steps
    best = 8 if Ho % 8 == 0 else Ho              # correctness fallback
    for tH in range(8, Ho, 8):                   # largest multiple-of-8 divisor in budget
        if Ho % tH == 0 and footprint(tH) <= budget_bytes:
            best = tH
    return best


def wsconv2d(x_nchw, weight_oihw, bias, *, stride=1, padding=1):
    """x_nchw: (N, C, H, W); weight_oihw: (OC, C, K, K); bias: (OC,)."""
    assert stride == 1, "this kernel implements stride=1 (module default)"
    N, C, H, W = x_nchw.shape
    OC, _, K, _ = weight_oihw.shape
    scale = float((2.0 / (C * K * K)) ** 0.5)

    Ho = H + 2 * padding - K + 1
    Wo = W + 2 * padding - K + 1
    Hp, Wp = H + 2 * padding, W + 2 * padding
    OCp = ((OC + 127) // 128) * 128              # lane-dense output channels

    tH = _pick_row_tile(Ho, Wo, Hp, Wp, C, OCp, K)
    nH = Ho // tH

    # ---- Glue (plain JAX): layout + padding + weight prep -------------------
    # TODO(synk): for production, accept/produce NHWC end-to-end and fold the
    # zero padding into the kernel to avoid these extra HBM passes.
    x_nhwc = jnp.transpose(x_nchw, (0, 2, 3, 1))
    x_pad = jnp.pad(x_nhwc, ((0, 0), (padding, padding), (padding, padding), (0, 0)))

    # Fold `scale` into the weight once; reshape to a (K*K*C, OCp) bf16 matrix.
    w_hwio = jnp.transpose(weight_oihw, (2, 3, 1, 0)) * scale        # (K, K, C, OC)
    w2d = w_hwio.reshape(K * K * C, OC)
    w2d = jnp.pad(w2d, ((0, 0), (0, OCp - OC))).astype(jnp.bfloat16)
    b2 = jnp.pad(bias, (0, OCp - OC)).reshape(1, OCp).astype(jnp.float32)

    kernel = functools.partial(_wsconv_kernel, tH=tH, Wo=Wo, C=C, K=K)

    out3 = pl.pallas_call(
        kernel,
        out_shape=jax.ShapeDtypeStruct((N, Ho * Wo, OCp), x_nchw.dtype),
        grid_spec=pltpu.PrefetchScalarGridSpec(
            num_scalar_prefetch=0,
            grid=(N, nH),
            in_specs=[
                # Block index depends only on n -> image stays VMEM-resident
                # across the inner row-tile axis (no re-DMA per tile).
                pl.BlockSpec((1, Hp, Wp, C), lambda n, i: (n, 0, 0, 0)),
                pl.BlockSpec((K * K * C, OCp), lambda n, i: (0, 0)),
                pl.BlockSpec((1, OCp), lambda n, i: (0, 0)),
            ],
            out_specs=pl.BlockSpec((1, tH * Wo, OCp), lambda n, i: (n, i, 0)),
        ),
        compiler_params=pltpu.CompilerParams(
            dimension_semantics=("parallel", "parallel"),
            # Working set is well under 1 MiB; 32 MiB is safely within the
            # scoped-VMEM limit on v5e / v6e / v7x.
            vmem_limit_bytes=32 * 1024 * 1024,
        ),
    )(x_pad, w2d, b2)

    out = out3.reshape(N, Ho, Wo, OCp)[..., :OC]     # drop channel padding
    return jnp.transpose(out, (0, 3, 1, 2))          # back to NCHW


if __name__ == "__main__":
    key = jax.random.PRNGKey(0)
    kx, kw = jax.random.split(key)

    N, C, H, W = 2, 4, 16, 16
    OC, K = 8, 3

    x = jax.random.normal(kx, (N, C, H, W), dtype=jnp.float32)
    # Deterministic init matching the module: weight ~ N(0,1), bias = 0.
    weight = jax.random.normal(kw, (OC, C, K, K), dtype=jnp.float32)
    bias = jnp.zeros((OC,), dtype=jnp.float32)

    out = wsconv2d(x, weight, bias)
    out = jax.block_until_ready(out)

    # Reference check against XLA's conv (same semantics as torch conv2d).
    scale = (2.0 / (C * K * K)) ** 0.5
    ref = jax.lax.conv_general_dilated(
        x * scale, weight, window_strides=(1, 1), padding=((1, 1), (1, 1)),
        dimension_numbers=("NCHW", "OIHW", "NCHW"),
    ) + bias.reshape(1, OC, 1, 1)

    assert out.shape == (N, OC, H, W)
    # bf16 MXU operands (f32 accumulation) -> loosened tolerance vs pure f32.
    assert jnp.allclose(out, ref, atol=5e-2, rtol=5e-2)

    print("KERNEL_OK")
</pallas_src>

<mosaic_0001>
module attributes {stable_mosaic.version = 11 : i64} {
  func.func @_wsconv_kernel(%arg0: i32, %arg1: i32, %arg2: memref<1x18x18x4xf32, #tpu.memory_space<vmem>>, %arg3: memref<36x128xbf16, #tpu.memory_space<vmem>>, %arg4: memref<1x128xf32, #tpu.memory_space<vmem>>, %arg5: memref<1x256x128xf32, #tpu.memory_space<vmem>>) attributes {dimension_semantics = [#tpu.dimension_semantics<parallel>, #tpu.dimension_semantics<parallel>], iteration_bounds = array<i64: 2, 1>, scalar_prefetch = 0 : i64, scratch_operands = 0 : i64, tpu.core_type = #tpu.core_type<tc>, window_params = [{transform_indices = @transform_0, window_bounds = array<i64: 1, 18, 18, 4>}, {pipeline_mode = #tpu.pipeline_mode<synchronous>, transform_indices = @transform_1, window_bounds = array<i64: 36, 128>}, {pipeline_mode = #tpu.pipeline_mode<synchronous>, transform_indices = @transform_2, window_bounds = array<i64: 1, 128>}, {transform_indices = @transform_3, window_bounds = array<i64: 1, 256, 128>}]} {
    %c16_i32 = arith.constant 16 : i32
    %0 = arith.muli %arg1, %c16_i32 : i32
    %1 = tpu.assume_multiple %0, 16 : i32
    %c0 = arith.constant 0 : index
    %2 = arith.index_cast %1 : i32 to index
    %c0_0 = arith.constant 0 : index
    %c0_1 = arith.constant 0 : index
    %3 = vector.load %arg2[%c0, %2, %c0_0, %c0_1] : memref<1x18x18x4xf32, #tpu.memory_space<vmem>>, vector<1x18x18x4xf32>
    %4 = vector.shape_cast %3 : vector<1x18x18x4xf32> to vector<18x18x4xf32>
    %5 = arith.truncf %4 : vector<18x18x4xf32> to vector<18x18x4xbf16>
    %6 = vector.extract_strided_slice %5 {offsets = [0, 0, 0], sizes = [16, 16, 4], strides = [1, 1, 1]} : vector<18x18x4xbf16> to vector<16x16x4xbf16>
    %7 = vector.shape_cast %6 : vector<16x16x4xbf16> to vector<256x4xbf16>
    %8 = vector.extract_strided_slice %5 {offsets = [0, 1, 0], sizes = [16, 16, 4], strides = [1, 1, 1]} : vector<18x18x4xbf16> to vector<16x16x4xbf16>
    %9 = vector.shape_cast %8 : vector<16x16x4xbf16> to vector<256x4xbf16>
    %10 = vector.extract_strided_slice %5 {offsets = [0, 2, 0], sizes = [16, 16, 4], strides = [1, 1, 1]} : vector<18x18x4xbf16> to vector<16x16x4xbf16>
    %11 = vector.shape_cast %10 : vector<16x16x4xbf16> to vector<256x4xbf16>
    %12 = vector.extract_strided_slice %5 {offsets = [1, 0, 0], sizes = [16, 16, 4], strides = [1, 1, 1]} : vector<18x18x4xbf16> to vector<16x16x4xbf16>
    %13 = vector.shape_cast %12 : vector<16x16x4xbf16> to vector<256x4xbf16>
    %14 = vector.extract_strided_slice %5 {offsets = [1, 1, 0], sizes = [16, 16, 4], strides = [1, 1, 1]} : vector<18x18x4xbf16> to vector<16x16x4xbf16>
    %15 = vector.shape_cast %14 : vector<16x16x4xbf16> to vector<256x4xbf16>
    %16 = vector.extract_strided_slice %5 {offsets = [1, 2, 0], sizes = [16, 16, 4], strides = [1, 1, 1]} : vector<18x18x4xbf16> to vector<16x16x4xbf16>
    %17 = vector.shape_cast %16 : vector<16x16x4xbf16> to vector<256x4xbf16>
    %18 = vector.extract_strided_slice %5 {offsets = [2, 0, 0], sizes = [16, 16, 4], strides = [1, 1, 1]} : vector<18x18x4xbf16> to vector<16x16x4xbf16>
    %19 = vector.shape_cast %18 : vector<16x16x4xbf16> to vector<256x4xbf16>
    %20 = vector.extract_strided_slice %5 {offsets = [2, 1, 0], sizes = [16, 16, 4], strides = [1, 1, 1]} : vector<18x18x4xbf16> to vector<16x16x4xbf16>
    %21 = vector.shape_cast %20 : vector<16x16x4xbf16> to vector<256x4xbf16>
    %22 = vector.extract_strided_slice %5 {offsets = [2, 2, 0], sizes = [16, 16, 4], strides = [1, 1, 1]} : vector<18x18x4xbf16> to vector<16x16x4xbf16>
    %23 = vector.shape_cast %22 : vector<16x16x4xbf16> to vector<256x4xbf16>
    %24 = tpu.concatenate %7, %9, %11, %13, %15, %17, %19, %21, %23 in 1 : vector<256x4xbf16>, vector<256x4xbf16>, vector<256x4xbf16>, vector<256x4xbf16>, vector<256x4xbf16>, vector<256x4xbf16>, vector<256x4xbf16>, vector<256x4xbf16>, vector<256x4xbf16> -> vector<256x36xbf16>
    %c0_2 = arith.constant 0 : index
    %c0_3 = arith.constant 0 : index
    %25 = vector.load %arg3[%c0_2, %c0_3] : memref<36x128xbf16, #tpu.memory_space<vmem>>, vector<36x128xbf16>
    %cst = arith.constant dense<0.000000e+00> : vector<256x128xf32>
    %26 = tpu.matmul %24, %25, %cst {dimension_numbers = #tpu.dot_dimension_numbers<[1], [0], [0], [1], [0, 0, 1, 1], [], []>} : vector<256x36xbf16>, vector<36x128xbf16>, vector<256x128xf32> -> vector<256x128xf32>
    %c0_4 = arith.constant 0 : index
    %c0_5 = arith.constant 0 : index
    %27 = vector.load %arg4[%c0_4, %c0_5] : memref<1x128xf32, #tpu.memory_space<vmem>>, vector<1x128xf32>
    %28 = vector.broadcast %27 : vector<1x128xf32> to vector<256x128xf32>
    %29 = arith.addf %26, %28 : vector<256x128xf32>
    %c0_6 = arith.constant 0 : index
    %c0_7 = arith.constant 0 : index
    %c0_8 = arith.constant 0 : index
    %30 = vector.load %arg5[%c0_6, %c0_7, %c0_8] : memref<1x256x128xf32, #tpu.memory_space<vmem>>, vector<1x256x128xf32>
    %31 = vector.shape_cast %30 : vector<1x256x128xf32> to vector<256x128xf32>
    %32 = vector.shape_cast %29 : vector<256x128xf32> to vector<1x256x128xf32>
    tpu.vector_store %arg5[%c0_6, %c0_7, %c0_8], %32 {strides = array<i32>} : memref<1x256x128xf32, #tpu.memory_space<vmem>>, vector<1x256x128xf32>,
    return
  }
  func.func @transform_0(%arg0: i32, %arg1: i32) -> (i32, i32, i32, i32) {
    %c0_i32 = arith.constant 0 : i32
    %c0_i32_0 = arith.constant 0 : i32
    %c0_i32_1 = arith.constant 0 : i32
    %c0_i32_2 = arith.constant 0 : i32
    return %arg0, %c0_i32, %c0_i32_0, %c0_i32_1 : i32, i32, i32, i32
  }
  func.func @transform_1(%arg0: i32, %arg1: i32) -> (i32, i32) {
    %c0_i32 = arith.constant 0 : i32
    %c0_i32_0 = arith.constant 0 : i32
    %c0_i32_1 = arith.constant 0 : i32
    return %c0_i32, %c0_i32_0 : i32, i32
  }
  func.func @transform_2(%arg0: i32, %arg1: i32) -> (i32, i32) {
    %c0_i32 = arith.constant 0 : i32
    %c0_i32_0 = arith.constant 0 : i32
    %c0_i32_1 = arith.constant 0 : i32
    return %c0_i32, %c0_i32_0 : i32, i32
  }
  func.func @transform_3(%arg0: i32, %arg1: i32) -> (i32, i32, i32) {
    %c0_i32 = arith.constant 0 : i32
    %c0_i32_0 = arith.constant 0 : i32
    return %arg0, %arg1, %c0_i32 : i32, i32, i32
  }
}

</mosaic_0001>

<bundles_post_ra>
// kernel: tpu_custom_call.1
= control target key start
LH: loop header
LB: loop body
LE: loop exit
PB: predicated region body
PF: predicated region fallthrough
CT: control target
= control target key end

     0   :  { %8 = vsyncpa [#allocation3], 0  ;;  %s3429_s0 = inlined_call_operand.vmem [shape: f32[2,18,18,4], index: 0, kind: input, shape index: {}]   ;;  %s3430_s1 = inlined_call_operand.vmem [shape: bf16[36,128], index: 1, kind: input, shape index: {}]   ;;  %s3431_s2 = inlined_call_operand.vmem [shape: f32[1,128], index: 2, kind: input, shape index: {}]   ;;  %s3432_s3 = inlined_call_operand.hbm [shape: f32[2,256,128], index: 3, kind: output, shape index: {}]  }
   0x1   :  { %10 = vsyncpa [#allocation3 + $0x1], 0  ;;  %s2128_s12 = smov 0   ;;  %s2130_s13 = smov 0  }
   0x2   :  { %s2132_s14 = smov 0   ;;  %s2134_s15 = smov 0  }
   0x3   :  { %s2136_s16 = smov 0   ;;  %s2138_s17 = smov 0  }
   0x4 LB: > { %s1887_s18 = sadd.s32 4294967295, %s2097_s17   ;;  %s1888_s19 = sadd.s32 4294967294, %s2097_s17   ;;  %s2097_s17 = sphi %s2138_s17, %s16_s17   ;;  %s2093_s16 = sphi %s2136_s16, %s3521_s16   ;;  %s2089_s15 = sphi %s2134_s15, %s3520_s15   ;;  %s2085_s14 = sphi %s2132_s14, %s3519_s14   ;;  %s2081_s13 = sphi %s2130_s13, %s3518_s13   ;;  %s2077_s12 = sphi %s2128_s12, %s3517_s12  }
   0x5   : > { %s28_s20 = sadd.s32 1, %s2093_s16  ;;  %s105_s21 = sadd.s32 1, %s2085_s14 }
   0x6   : > { %p30_p0 = scmp.ge.s32.totalorder %s28_s20, 2  ;;  %p115_p1 = scmp.ne.s32.totalorder %s2085_s14, %s2081_s13 }
   0x7   : > { %p116_p2 = scmp.eq.s32.totalorder %s1887_s18, 1  ;;  %p121_p3 = scmp.ne.s32.totalorder %s2081_s13, %s2077_s12 }
   0x8   : > { %s3523_s20 = smov (%p30_p0, %s28_s20), 0  ;;  %p122_p5 = scmp.eq.s32.totalorder %s1888_s19, 1 }
   0x9   : > { %p2168_p4 = por %p116_p2, %p115_p1  ;;  %s100_s23 = ssub.s32 %s2093_s16, %s3523_s20 }
   0xa   : > { %p1891_p6 = scmp.ge.s32.totalorder %s2097_s17, 1  ;;  %p103_p7 = scmp.eq.s32.totalorder %s100_s23, 0 }
   0xb   : > { %p2175_p8 = por %p122_p5, %p121_p3  ;;  %p154_p9 = scmp.lt.s32.totalorder %s2097_s17, 3 }
   0xc   : > { %s2181_s25 = scalar_select %p103_p7, %s2085_s14, %s105_s21  }
   0xd   : > { %p155_p10 = pnand %p1891_p6, %p154_p9 }
   0xf   : > { %158 = sbr.rel (%p155_p10) target bundleno = 682 (0x2aa), region = 32 }
  0x14   : > { %p178_p11 = scmp.lt.s32.totalorder %s2089_s15, 1  ;;  %vm296_vm0 = vsmask.f32 3328  ;;  %vm297_vm1 = vsmask.f32 7440  ;;  %s2099_s4 = smov 4  }
  0x15   : > { %vm2223_vm2 = vmor %vm296_vm0, %vm297_vm1  ;;  %vm731_vm3 = vcmask 1042432   ;;  %vm732_vm4 = vcmask 1046532   ;;  %s2100_s5 = smov 8   ;;  %s2101_s6 = smov 12   ;;  %vm1332_vm6 = vcmask 31744   ;;  %vm1381_vm7 = vcmask 64512  }
  0x16   : > { %s179_s26 = scalar_select %p178_p11, %s2089_s15, 1  ;;  %vm2512_vm5 = vmor %vm731_vm3, %vm732_vm4  ;;  %vm1414_vm8 = vcmask 97280   ;;  %vm1669_vm9 = vcmask 1041408   ;;  %vm1447_vm10 = vcmask 130048   ;;  %vm1480_vm11 = vcmask 162816  }
  0x17   : > { %s2102_s7 = smov 16   ;;  %s2103_s8 = smov 20   ;;  %vm1513_vm12 = vcmask 195584   ;;  %vm1546_vm13 = vcmask 228352   ;;  %vm1579_vm14 = vcmask 261120   ;;  %vm1636_vm15 = vcmask 293888  }
  0x18   : > { %s1953_s27 = smul.u32 432, %s179_s26  ;;  %s2104_s9 = smov 28  }
  0x19   : > { %s2105_s10 = smov 24   ;;  %s2106_s11 = smov 32  }
  0x1a   : > { %s2188_s30 = scalar_lea.vmem %s3429_s0, %s1953_s27  ;;  %s175_s28 = sand.u32 1, %s2081_s13  }
  0x1b   : > { %v200_v0 = vld [vmem:[%s2188_s30 + $0x60] sm:$0xff]  ;;  %v201_v1 = vld [vmem:[%s2188_s30 + $0x68] sm:$0xff]  ;;  %v202_v2 = vld [vmem:[%s2188_s30 + $0x70] sm:$0x3]  ;;  %s1892_s29 = sshll.u32 %s175_s28, 8  ;;  %s2039_s27 = scalar_lea.hbm %s3432_s3, 512 }
  0x1c   : > { %v2193_v3 = vpack.c.bf16 %v200_v0, %v200_v0  ;;  %v2195_v4 = vpack.c.bf16 %v201_v1, %v201_v1  ;;  %v2197_v5 = vpack.c.bf16 %v202_v2, %v202_v2  ;;  %v194_v6 = vld [vmem:[%s2188_s30 + $0x30] sm:$0xff]  ;;  %v195_v7 = vld [vmem:[%s2188_s30 + $0x38] sm:$0xff]  ;;  %v196_v8 = vld [vmem:[%s2188_s30 + $0x40] sm:$0x3] }
  0x1d   : > { %v2202_v9 = vpack.c.bf16 %v194_v6, %v194_v6  ;;  %v2204_v10 = vpack.c.bf16 %v195_v7, %v195_v7  ;;  %v2206_v11 = vpack.c.bf16 %v196_v8, %v196_v8  ;;  %v188_v20 = vld [vmem:[%s2188_s30] sm:$0xff]  ;;  %v189_v21 = vld [vmem:[%s2188_s30 + $0x8] sm:$0xff]  ;;  %v190_v26 = vld [vmem:[%s2188_s30 + $0x10] sm:$0x3] }
  0x1e   : > { %v396_v12 = vshrl.u32 %v2193_v3, 16  ;;  %v399_v13 = vshll.u32 %v2193_v3, 16  ;;  %v405_v14 = vshll.u32 %v2195_v4, 16  ;;  %v409_v15 = vshrl.u32 %v2195_v4, 16  ;;  %v203_v52 = vld [vmem:[%s2188_s30 + $0x78] sm:$0xff]  ;;  %v204_v57 = vld [vmem:[%s2188_s30 + $0x80] sm:$0xff] }
  0x1f   : > { %v415_v16 = vshll.u32 %v2197_v5, 16  ;;  %v348_v17 = vshrl.u32 %v2202_v9, 16  ;;  %v351_v18 = vshll.u32 %v2202_v9, 16  ;;  %v357_v19 = vshll.u32 %v2204_v10, 16  ;;  %v205_v58 = vld [vmem:[%s2188_s30 + $0x88] sm:$0x3] }
  0x20   : > { %v398_v22 = vrot.slane %v396_v12, 4  ;;  %v401_v23 = vrot.slane %v399_v13, 5  ;;  %v407_v24 = vrot.slane %v405_v14, 5  ;;  %v411_v25 = vrot.slane %v409_v15, 4 }
  0x21   : > { %v417_v27 = vrot.slane %v415_v16, 5  ;;  %v350_v28 = vrot.slane %v348_v17, 4  ;;  %v353_v29 = vrot.slane %v351_v18, 5  ;;  %v359_v30 = vrot.slane %v357_v19, 5 }
  0x22   : > { %v402_v31 = vor.u32 %v401_v23, %v398_v22  ;;  %v412_v32 = vor.u32 %v411_v25, %v407_v24  ;;  %v361_v33 = vshrl.u32 %v2204_v10, 16  ;;  %v367_v34 = vshll.u32 %v2206_v11, 16 }
  0x23   : > { %v354_v36 = vor.u32 %v353_v29, %v350_v28  ;;  %v2227_v37 = vpack.c.bf16 %v188_v20, %v188_v20  ;;  %v2229_v38 = vpack.c.bf16 %v189_v21, %v189_v21  ;;  %v2231_v39 = vpack.c.bf16 %v190_v26, %v190_v26  ;;  %v197_v21 = vld [vmem:[%s2188_s30 + $0x48] sm:$0xff]  ;;  %v198_v26 = vld [vmem:[%s2188_s30 + $0x50] sm:$0xff] }
  0x24   : > { %v403_v40 = vrot.slane %v402_v31, 4  ;;  %v413_v41 = vrot.slane %v412_v32, 4  ;;  %v363_v42 = vrot.slane %v361_v33, 4  ;;  %v369_v43 = vrot.slane %v367_v34, 5  ;;  %v199_v31 = vld [vmem:[%s2188_s30 + $0x58] sm:$0x3] }
  0x25   : > { %3473 = vst [vmem:[#allocation5_spill] sm:$0xff] %v2227_v37  ;;  %v355_v44 = vrot.slane %v354_v36, 4  ;;  %v300_v45 = vshrl.u32 %v2227_v37, 16  ;;  %v303_v46 = vshll.u32 %v2227_v37, 16  ;;  %v309_v47 = vshll.u32 %v2229_v38, 16  ;;  %v191_v32 = vld [vmem:[%s2188_s30 + $0x18] sm:$0xff] }
  0x26   : > { %3474 = vst [vmem:[#allocation6_spill] sm:$0xff] %v2229_v38  ;;  %v408_v48 = vsel %vm2223_vm2, %v403_v40, %v407_v24  ;;  %v418_v49 = vsel %vm2223_vm2, %v413_v41, %v417_v27  ;;  %v364_v50 = vor.u32 %v363_v42, %v359_v30  ;;  %v313_v51 = vshrl.u32 %v2229_v38, 16 }
  0x27   : > { %v970_v53 = vunpack.c.l.b16 %v408_v48  ;;  %v971_v54 = vunpack.c.l.b16 %v418_v49  ;;  %v360_v55 = vsel %vm2223_vm2, %v355_v44, %v359_v30  ;;  %v302_v56 = vrot.slane %v300_v45, 4  ;;  %v192_v48 = vld [vmem:[%s2188_s30 + $0x20] sm:$0xff] }
  0x28   : > { %v365_v59 = vrot.slane %v364_v50, 4  ;;  %v966_v60 = vunpack.c.l.b16 %v360_v55  ;;  %v305_v61 = vrot.slane %v303_v46, 5  ;;  %v311_v62 = vrot.slane %v309_v47, 5 }
  0x29   : > { %v2246_v63 = vpack.c.b16 %v971_v54, %v970_v53  ;;  %v315_v0 = vrot.slane %v313_v51, 4  ;;  %v319_v1 = vshll.u32 %v2231_v39, 16  ;;  %v2249_v2 = vpack.c.bf16 %v203_v52, %v203_v52 }
  0x2a   : > { %v370_v6 = vsel %vm2223_vm2, %v365_v59, %v369_v43  ;;  %v306_v7 = vor.u32 %v305_v61, %v302_v56  ;;  %v2253_v8 = vpack.c.bf16 %v204_v57, %v204_v57  ;;  %v2255_v12 = vpack.c.bf16 %v205_v58, %v205_v58  ;;  %v193_v58 = vld [vmem:[%s2188_s30 + $0x28] sm:$0x3] }
  0x2b   : > { %3475 = vst [vmem:[#allocation7_spill] sm:$0xff] %v2246_v63  ;;  %1018 = vrot.lane.b32.xlu2 %v2246_v63, %s2099_s4  ;;  %v967_v13 = vunpack.c.l.b16 %v370_v6  ;;  %v316_v14 = vor.u32 %v315_v0, %v311_v62  ;;  %v321_v15 = vrot.slane %v319_v1, 5  ;;  %v420_v16 = vshrl.u32 %v2249_v2, 16 }
  0x2c   : > { %v307_v17 = vrot.slane %v306_v7, 4  ;;  %v423_v18 = vshll.u32 %v2249_v2, 16  ;;  %v429_v19 = vshll.u32 %v2253_v8, 16  ;;  %v433_v20 = vshrl.u32 %v2253_v8, 16 }
  0x2d   : > { %v2264_v22 = vpack.c.b16 %v967_v13, %v966_v60  ;;  %v317_v23 = vrot.slane %v316_v14, 4  ;;  %v422_v24 = vrot.slane %v420_v16, 4  ;;  %v439_v25 = vshll.u32 %v2255_v12, 16 }
  0x2e   : > { %v312_v27 = vsel %vm2223_vm2, %v307_v17, %v311_v62  ;;  %v425_v28 = vrot.slane %v423_v18, 5  ;;  %v431_v29 = vrot.slane %v429_v19, 5  ;;  %v435_v30 = vrot.slane %v433_v20, 4  ;;  %v212_v17 = vld [vmem:[%s2188_s30 + $0xc0] sm:$0xff] }
  0x2f   : > { %3476 = vst [vmem:[#allocation8_spill] sm:$0xff] %v2264_v22  ;;  %1014 = vrot.lane.b32.xlu1 %v2264_v22, %s2099_s4  ;;  %v322_v33 = vsel %vm2223_vm2, %v317_v23, %v321_v15  ;;  %v962_v34 = vunpack.c.l.b16 %v312_v27  ;;  %v441_v36 = vrot.slane %v439_v25, 5  ;;  %v2276_v40 = vpack.c.bf16 %v197_v21, %v197_v21  ;;  %v213_v23 = vld [vmem:[%s2188_s30 + $0xc8] sm:$0xff] }
  0x30   : > { %v963_v41 = vunpack.c.l.b16 %v322_v33  ;;  %v426_v42 = vor.u32 %v425_v28, %v422_v24  ;;  %v436_v43 = vor.u32 %v435_v30, %v431_v29  ;;  %v2278_v44 = vpack.c.bf16 %v198_v26, %v198_v26  ;;  %v214_v28 = vld [vmem:[%s2188_s30 + $0xd0] sm:$0x3] }
  0x31   : > { %v2280_v45 = vpack.c.bf16 %v199_v31, %v199_v31  ;;  %v372_v46 = vshrl.u32 %v2276_v40, 16  ;;  %v375_v47 = vshll.u32 %v2276_v40, 16  ;;  %v2285_v49 = vpack.c.bf16 %v191_v32, %v191_v32 }
  0x32   : > { %v994_v50 = vpack.c.b16 %v963_v41, %v962_v34  ;;  %v427_v51 = vrot.slane %v426_v42, 4  ;;  %v437_v52 = vrot.slane %v436_v43, 4  ;;  %v381_v53 = vshll.u32 %v2278_v44, 16 }
  0x33   : > { %v374_v54 = vrot.slane %v372_v46, 4  ;;  %v377_v55 = vrot.slane %v375_v47, 5  ;;  %v385_v56 = vshrl.u32 %v2278_v44, 16  ;;  %v391_v57 = vshll.u32 %v2280_v45, 16 }
  0x34   : > { %1010 = vrot.lane.b32.xlu0 %v994_v50, %s2099_s4  ;;  %v432_v59 = vsel %vm2223_vm2, %v427_v51, %v431_v29  ;;  %v442_v60 = vsel %vm2223_vm2, %v437_v52, %v441_v36  ;;  %v383_v61 = vrot.slane %v381_v53, 5  ;;  %v2296_v62 = vpack.c.bf16 %v192_v48, %v192_v48 }
  0x35   : > { %v972_v0 = vunpack.c.l.b16 %v432_v59  ;;  %v973_v1 = vunpack.c.l.b16 %v442_v60  ;;  %v378_v6 = vor.u32 %v377_v55, %v374_v54  ;;  %v387_v7 = vrot.slane %v385_v56, 4 }
  0x36   : > { %v393_v13 = vrot.slane %v391_v57, 5  ;;  %v2298_v14 = vpack.c.bf16 %v193_v58, %v193_v58  ;;  %v324_v15 = vshrl.u32 %v2285_v49, 16  ;;  %v327_v16 = vshll.u32 %v2285_v49, 16  ;;  %v209_v57 = vld [vmem:[%s2188_s30 + $0xa8] sm:$0xff]  ;;  %v210_v58 = vld [vmem:[%s2188_s30 + $0xb0] sm:$0xff] }
  0x37   : > { %v2303_v18 = vpack.c.b16 %v973_v1, %v972_v0  ;;  %v379_v19 = vrot.slane %v378_v6, 4  ;;  %v388_v20 = vor.u32 %v387_v7, %v383_v61  ;;  %v333_v21 = vshll.u32 %v2296_v62, 16  ;;  %v211_v1 = vld [vmem:[%s2188_s30 + $0xb8] sm:$0x3]  ;;  %v206_v6 = vld [vmem:[%s2188_s30 + $0x90] sm:$0xff] }
  0x38   : > { %v326_v24 = vrot.slane %v324_v15, 4  ;;  %v329_v25 = vrot.slane %v327_v16, 5  ;;  %v337_v26 = vshrl.u32 %v2296_v62, 16  ;;  %v343_v27 = vshll.u32 %v2298_v14, 16 }
  0x39   : > { %3477 = vst [vmem:[#allocation9_spill] sm:$0xff] %v2303_v18  ;;  %1020 = vrot.lane.b32.xlu2 %v2303_v18, %s2099_s4  ;;  %v384_v29 = vsel %vm2223_vm2, %v379_v19, %v383_v61  ;;  %v389_v30 = vrot.slane %v388_v20, 4  ;;  %v335_v31 = vrot.slane %v333_v21, 5  ;;  %v2314_v32 = vpack.c.bf16 %v212_v17, %v212_v17 }
  0x3a   : > { %v968_v33 = vunpack.c.l.b16 %v384_v29  ;;  %v330_v34 = vor.u32 %v329_v25, %v326_v24  ;;  %v339_v36 = vrot.slane %v337_v26, 4  ;;  %v345_v41 = vrot.slane %v343_v27, 5 }
  0x3b   : > { %v394_v42 = vsel %vm2223_vm2, %v389_v30, %v393_v13  ;;  %v2318_v43 = vpack.c.bf16 %v213_v23, %v213_v23  ;;  %v2320_v46 = vpack.c.bf16 %v214_v28, %v214_v28  ;;  %v492_v47 = vshrl.u32 %v2314_v32, 16 }
  0x3c   : > { %v969_v48 = vunpack.c.l.b16 %v394_v42  ;;  %v331_v50 = vrot.slane %v330_v34, 4  ;;  %v340_v51 = vor.u32 %v339_v36, %v335_v31  ;;  %v495_v52 = vshll.u32 %v2314_v32, 16  ;;  %v208_v42 = vld [vmem:[%s2188_s30 + $0xa0] sm:$0x3] }
  0x3d   : > { %v494_v53 = vrot.slane %v492_v47, 4  ;;  %v501_v54 = vshll.u32 %v2318_v43, 16  ;;  %v505_v55 = vshrl.u32 %v2318_v43, 16  ;;  %v511_v56 = vshll.u32 %v2320_v46, 16 }
  0x3e   : > { %v2329_v59 = vpack.c.b16 %v969_v48, %v968_v33  ;;  %v336_v60 = vsel %vm2223_vm2, %v331_v50, %v335_v31  ;;  %v341_v61 = vrot.slane %v340_v51, 4  ;;  %v497_v0 = vrot.slane %v495_v52, 5  ;;  %v221_v52 = vld [vmem:[%s2188_s30 + $0x108] sm:$0xff] }
  0x3f   : > { %v964_v7 = vunpack.c.l.b16 %v336_v60  ;;  %v503_v13 = vrot.slane %v501_v54, 5  ;;  %v507_v15 = vrot.slane %v505_v55, 4  ;;  %v513_v16 = vrot.slane %v511_v56, 5 }
  0x40   : > { %3478 = vst [vmem:[#allocation10_spill] sm:$0xff] %v2329_v59  ;;  %1016 = vrot.lane.b32.xlu1 %v2329_v59, %s2099_s4  ;;  %v346_v17 = vsel %vm2223_vm2, %v341_v61, %v345_v41  ;;  %v498_v19 = vor.u32 %v497_v0, %v494_v53  ;;  %v2339_v20 = vpack.c.bf16 %v209_v57, %v209_v57  ;;  %v207_v41 = vld [vmem:[%s2188_s30 + $0x98] sm:$0xff] }
  0x41   : > { %v2341_v21 = vpack.c.bf16 %v210_v58, %v210_v58  ;;  %v965_v23 = vunpack.c.l.b16 %v346_v17  ;;  %v508_v24 = vor.u32 %v507_v15, %v503_v13  ;;  %v2343_v25 = vpack.c.bf16 %v211_v1, %v211_v1 }
  0x42   : > { %v2345_v26 = vpack.c.bf16 %v206_v6, %v206_v6  ;;  %v499_v27 = vrot.slane %v498_v19, 4  ;;  %v468_v28 = vshrl.u32 %v2339_v20, 16  ;;  %v471_v29 = vshll.u32 %v2339_v20, 16 }
  0x43   : > { %v477_v30 = vshll.u32 %v2341_v21, 16  ;;  %v2350_v31 = vpack.c.b16 %v965_v23, %v964_v7  ;;  %v509_v33 = vrot.slane %v508_v24, 4  ;;  %v481_v34 = vshrl.u32 %v2341_v21, 16  ;;  %v222_v7 = vld [vmem:[%s2188_s30 + $0x110] sm:$0xff] }
  0x44   : > { %v487_v36 = vshll.u32 %v2343_v25, 16  ;;  %v504_v47 = vsel %vm2223_vm2, %v499_v27, %v503_v13  ;;  %v470_v48 = vrot.slane %v468_v28, 4  ;;  %v473_v50 = vrot.slane %v471_v29, 5  ;;  %v223_v29 = vld [vmem:[%s2188_s30 + $0x118] sm:$0x3] }
  0x45   : > { %3479 = vst [vmem:[#allocation11_spill] sm:$0xff] %v2350_v31  ;;  %v479_v51 = vrot.slane %v477_v30, 5  ;;  %1012 = vrot.lane.b32.xlu0 %v2350_v31, %s2099_s4  ;;  %v514_v53 = vsel %vm2223_vm2, %v509_v33, %v513_v16  ;;  %v978_v54 = vunpack.c.l.b16 %v504_v47  ;;  %v483_v55 = vrot.slane %v481_v34, 4 }
  0x46   : > { %v489_v56 = vrot.slane %v487_v36, 5  ;;  %v979_v57 = vunpack.c.l.b16 %v514_v53  ;;  %v474_v58 = vor.u32 %v473_v50, %v470_v48  ;;  %v2363_v60 = vpack.c.bf16 %v207_v41, %v207_v41 }
  0x47   : > { %v2365_v61 = vpack.c.bf16 %v208_v42, %v208_v42  ;;  %v484_v0 = vor.u32 %v483_v55, %v479_v51  ;;  %v444_v1 = vshrl.u32 %v2345_v26, 16  ;;  %v447_v6 = vshll.u32 %v2345_v26, 16 }
  0x48   : > { %v2370_v13 = vpack.c.bf16 %v221_v52, %v221_v52  ;;  %v2372_v15 = vpack.c.b16 %v979_v57, %v978_v54  ;;  %v475_v16 = vrot.slane %v474_v58, 4  ;;  %v453_v17 = vshll.u32 %v2363_v60, 16 }
  0x49   : > { %v457_v19 = vshrl.u32 %v2363_v60, 16  ;;  %v485_v23 = vrot.slane %v484_v0, 4  ;;  %v446_v24 = vrot.slane %v444_v1, 4  ;;  %v449_v27 = vrot.slane %v447_v6, 5 }
  0x4a   : > { %3480 = vst [vmem:[#allocation12_spill] sm:$0xff] %v2370_v13  ;;  %v463_v28 = vshll.u32 %v2365_v61, 16  ;;  %1026 = vrot.lane.b32.xlu2 %v2372_v15, %s2099_s4  ;;  %v480_v30 = vsel %vm2223_vm2, %v475_v16, %v479_v51  ;;  %v455_v33 = vrot.slane %v453_v17, 5  ;;  %v2382_v36 = vpack.c.bf16 %v222_v7, %v222_v7  ;;  %v219_v16 = vld [vmem:[%s2188_s30 + $0xf8] sm:$0xff] }
  0x4b   : > { %3481 = vst [vmem:[#allocation13_spill] sm:$0xff] %v2372_v15  ;;  %v459_v34 = vrot.slane %v457_v19, 4  ;;  %v490_v41 = vsel %vm2223_vm2, %v485_v23, %v489_v56  ;;  %v976_v42 = vunpack.c.l.b16 %v480_v30  ;;  %v450_v47 = vor.u32 %v449_v27, %v446_v24  ;;  %v218_v56 = vld [vmem:[%s2188_s30 + $0xf0] sm:$0xff]  ;;  %v220_v27 = vld [vmem:[%s2188_s30 + $0x100] sm:$0x3] }
  0x4c   : > { %v465_v48 = vrot.slane %v463_v28, 5  ;;  %v977_v50 = vunpack.c.l.b16 %v490_v41  ;;  %v2386_v53 = vpack.c.bf16 %v223_v29, %v223_v29  ;;  %v564_v54 = vshrl.u32 %v2370_v13, 16  ;;  %v215_v28 = vld [vmem:[%s2188_s30 + $0xd8] sm:$0xff] }
  0x4d   : > { %v460_v52 = vor.u32 %v459_v34, %v455_v33  ;;  %v451_v51 = vrot.slane %v450_v47, 4  ;;  %v567_v55 = vshll.u32 %v2370_v13, 16  ;;  %v573_v57 = vshll.u32 %v2382_v36, 16 }
  0x4e   : > { %3482 = vst [vmem:[#allocation14_spill] sm:$0xff] %v2386_v53  ;;  %v577_v58 = vshrl.u32 %v2382_v36, 16  ;;  %v2393_v0 = vpack.c.b16 %v977_v50, %v976_v42  ;;  %v566_v6 = vrot.slane %v564_v54, 4  ;;  %v583_v7 = vshll.u32 %v2386_v53, 16 }
  0x4f   : > { %v461_v1 = vrot.slane %v460_v52, 4  ;;  %v456_v17 = vsel %vm2223_vm2, %v451_v51, %v455_v33  ;;  %v569_v19 = vrot.slane %v567_v55, 5  ;;  %v575_v23 = vrot.slane %v573_v57, 5  ;;  %v216_v55 = vld [vmem:[%s2188_s30 + $0xe0] sm:$0xff] }
  0x50   : > { %3483 = vst [vmem:[#allocation15_spill] sm:$0xff] %v2393_v0  ;;  %v579_v24 = vrot.slane %v577_v58, 4  ;;  %1024 = vrot.lane.b32.xlu1 %v2393_v0, %s2099_s4  ;;  %v974_v30 = vunpack.c.l.b16 %v456_v17  ;;  %v585_v34 = vrot.slane %v583_v7, 5  ;;  %v2405_v41 = vpack.c.bf16 %v218_v56, %v218_v56 }
  0x51   : > { %v466_v29 = vsel %vm2223_vm2, %v461_v1, %v465_v48  ;;  %v570_v47 = vor.u32 %v569_v19, %v566_v6  ;;  %v2407_v50 = vpack.c.bf16 %v219_v16, %v219_v16  ;;  %v2409_v52 = vpack.c.bf16 %v220_v27, %v220_v27  ;;  %v217_v19 = vld [vmem:[%s2188_s30 + $0xe8] sm:$0x3] }
  0x52   : > { %v975_v42 = vunpack.c.l.b16 %v466_v29  ;;  %v580_v33 = vor.u32 %v579_v24, %v575_v23  ;;  %v540_v54 = vshrl.u32 %v2405_v41, 16  ;;  %v543_v51 = vshll.u32 %v2405_v41, 16 }
  0x53   : > { %v2414_v57 = vpack.c.bf16 %v215_v28, %v215_v28  ;;  %v571_v58 = vrot.slane %v570_v47, 4  ;;  %v549_v1 = vshll.u32 %v2407_v50, 16  ;;  %v553_v16 = vshrl.u32 %v2407_v50, 16 }
  0x54   : > { %v2416_v48 = vpack.c.b16 %v975_v42, %v974_v30  ;;  %v581_v56 = vrot.slane %v580_v33, 4  ;;  %v542_v6 = vrot.slane %v540_v54, 4  ;;  %v545_v7 = vrot.slane %v543_v51, 5 }
  0x55   : > { %v559_v17 = vshll.u32 %v2409_v52, 16  ;;  %v576_v24 = vsel %vm2223_vm2, %v571_v58, %v575_v23  ;;  %v551_v28 = vrot.slane %v549_v1, 5  ;;  %v2428_v29 = vpack.c.bf16 %v216_v55, %v216_v55  ;;  %v230_v23 = vld [vmem:[%s2188_s30 + $0x150] sm:$0xff]  ;;  %v231_v1 = vld [vmem:[%s2188_s30 + $0x158] sm:$0xff] }
  0x56   : > { %3484 = vst [vmem:[#allocation16_spill] sm:$0xff] %v2416_v48  ;;  %1022 = vrot.lane.b32.xlu0 %v2416_v48, %s2099_s4  ;;  %v586_v27 = vsel %vm2223_vm2, %v581_v56, %v585_v34  ;;  %v984_v30 = vunpack.c.l.b16 %v576_v24  ;;  %v546_v47 = vor.u32 %v545_v7, %v542_v6  ;;  %v555_v33 = vrot.slane %v553_v16, 4  ;;  %v232_v16 = vld [vmem:[%s2188_s30 + $0x160] sm:$0x3] }
  0x57   : > { %v985_v42 = vunpack.c.l.b16 %v586_v27  ;;  %v561_v54 = vrot.slane %v559_v17, 5  ;;  %v2430_v51 = vpack.c.bf16 %v217_v19, %v217_v19  ;;  %v516_v15 = vshrl.u32 %v2414_v57, 16 }
  0x58   : > { %v519_v63 = vshll.u32 %v2414_v57, 16  ;;  %v547_v34 = vrot.slane %v546_v47, 4  ;;  %v556_v56 = vor.u32 %v555_v33, %v551_v28  ;;  %v525_v55 = vshll.u32 %v2428_v29, 16 }
  0x59   : > { %v2435_v58 = vpack.c.b16 %v985_v42, %v984_v30  ;;  %v518_v24 = vrot.slane %v516_v15, 4  ;;  %v529_v6 = vshrl.u32 %v2428_v29, 16  ;;  %v535_v7 = vshll.u32 %v2430_v51, 16 }
  0x5a   : > { %v521_v27 = vrot.slane %v519_v63, 5  ;;  %v552_v17 = vsel %vm2223_vm2, %v547_v34, %v551_v28  ;;  %v557_v19 = vrot.slane %v556_v56, 4  ;;  %v527_v30 = vrot.slane %v525_v55, 5 }
  0x5b   : > { %3485 = vst [vmem:[#allocation17_spill] sm:$0xff] %v2435_v58  ;;  %1032 = vrot.lane.b32.xlu2 %v2435_v58, %s2099_s4  ;;  %v2446_v42 = vpack.c.bf16 %v230_v23, %v230_v23  ;;  %v982_v47 = vunpack.c.l.b16 %v552_v17  ;;  %v531_v63 = vrot.slane %v529_v6, 4  ;;  %v537_v15 = vrot.slane %v535_v7, 5  ;;  %v228_v7 = vld [vmem:[%s2188_s30 + $0x140] sm:$0xff] }
  0x5c   : > { %v522_v33 = vor.u32 %v521_v27, %v518_v24  ;;  %v562_v59 = vsel %vm2223_vm2, %v557_v19, %v561_v54  ;;  %v2450_v0 = vpack.c.bf16 %v231_v1, %v231_v1  ;;  %v2452_v48 = vpack.c.bf16 %v232_v16, %v232_v16  ;;  %v227_v1 = vld [vmem:[%s2188_s30 + $0x138] sm:$0xff] }
  0x5d   : > { %3486 = vst [vmem:[#allocation18_spill] sm:$0xff] %v2446_v42  ;;  %v636_v28 = vshrl.u32 %v2446_v42, 16  ;;  %v983_v34 = vunpack.c.l.b16 %v562_v59  ;;  %v532_v56 = vor.u32 %v531_v63, %v527_v30  ;;  %v639_v55 = vshll.u32 %v2446_v42, 16  ;;  %v224_v63 = vld [vmem:[%s2188_s30 + $0x120] sm:$0xff] }
  0x5e   : > { %3487 = vst [vmem:[#allocation19_spill] sm:$0xff] %v2450_v0  ;;  %v523_v23 = vrot.slane %v522_v33, 4  ;;  %v645_v27 = vshll.u32 %v2450_v0, 16  ;;  %v649_v6 = vshrl.u32 %v2450_v0, 16  ;;  %v655_v54 = vshll.u32 %v2452_v48, 16 }
  0x5f   : > { %3488 = vst [vmem:[#allocation20_spill] sm:$0xff] %v2452_v48  ;;  %v638_v24 = vrot.slane %v636_v28, 4  ;;  %v2461_v16 = vpack.c.b16 %v983_v34, %v982_v47  ;;  %v533_v19 = vrot.slane %v532_v56, 4  ;;  %v641_v59 = vrot.slane %v639_v55, 5  ;;  %v229_v33 = vld [vmem:[%s2188_s30 + $0x148] sm:$0x3] }
  0x60   : > { %v528_v17 = vsel %vm2223_vm2, %v523_v23, %v527_v30  ;;  %v647_v18 = vrot.slane %v645_v27, 5  ;;  %v651_v28 = vrot.slane %v649_v6, 4  ;;  %v657_v31 = vrot.slane %v655_v54, 5 }
  0x61   : > { %3489 = vst [vmem:[#allocation21_spill] sm:$0xff] %v2461_v16  ;;  %v980_v58 = vunpack.c.l.b16 %v528_v17  ;;  %1030 = vrot.lane.b32.xlu1 %v2461_v16, %s2099_s4  ;;  %v538_v22 = vsel %vm2223_vm2, %v533_v19, %v537_v15  ;;  %v642_v47 = vor.u32 %v641_v59, %v638_v24  ;;  %v2471_v34 = vpack.c.bf16 %v227_v1, %v227_v1  ;;  %v226_v59 = vld [vmem:[%s2188_s30 + $0x130] sm:$0x3] }
  0x62   : > { %v2473_v30 = vpack.c.bf16 %v228_v7, %v228_v7  ;;  %v981_v23 = vunpack.c.l.b16 %v538_v22  ;;  %v652_v56 = vor.u32 %v651_v28, %v647_v18  ;;  %v2475_v55 = vpack.c.bf16 %v229_v33, %v229_v33  ;;  %v225_v22 = vld [vmem:[%s2188_s30 + $0x128] sm:$0xff] }
  0x63   : > { %v2477_v27 = vpack.c.bf16 %v224_v63, %v224_v63  ;;  %v643_v6 = vrot.slane %v642_v47, 4  ;;  %v612_v54 = vshrl.u32 %v2471_v34, 16  ;;  %v615_v17 = vshll.u32 %v2471_v34, 16 }
  0x64   : > { %v621_v15 = vshll.u32 %v2473_v30, 16  ;;  %v2482_v19 = vpack.c.b16 %v981_v23, %v980_v58  ;;  %v653_v24 = vrot.slane %v652_v56, 4  ;;  %v625_v1 = vshrl.u32 %v2473_v30, 16 }
  0x65   : > { %v631_v7 = vshll.u32 %v2475_v55, 16  ;;  %v648_v33 = vsel %vm2223_vm2, %v643_v6, %v647_v18  ;;  %v614_v63 = vrot.slane %v612_v54, 4  ;;  %v617_v28 = vrot.slane %v615_v17, 5 }
  0x66   : > { %v623_v47 = vrot.slane %v621_v15, 5  ;;  %1028 = vrot.lane.b32.xlu0 %v2482_v19, %s2099_s4  ;;  %v658_v58 = vsel %vm2223_vm2, %v653_v24, %v657_v31  ;;  %v990_v23 = vunpack.c.l.b16 %v648_v33  ;;  %v627_v56 = vrot.slane %v625_v1, 4 }
  0x67   : > { %v633_v16 = vrot.slane %v631_v7, 5  ;;  %v991_v48 = vunpack.c.l.b16 %v658_v58  ;;  %v618_v42 = vor.u32 %v617_v28, %v614_v63  ;;  %v2494_v0 = vpack.c.bf16 %v225_v22, %v225_v22 }
  0x68   : > { %v2496_v53 = vpack.c.bf16 %v226_v59, %v226_v59  ;;  %v628_v13 = vor.u32 %v627_v56, %v623_v47  ;;  %v588_v18 = vshrl.u32 %v2477_v27, 16  ;;  %v591_v6 = vshll.u32 %v2477_v27, 16 }
  0x69   : > { %v2500_v54 = vpack.c.b16 %v991_v48, %v990_v23  ;;  %v619_v17 = vrot.slane %v618_v42, 4  ;;  %v597_v31 = vshll.u32 %v2494_v0, 16  ;;  %v601_v15 = vshrl.u32 %v2494_v0, 16 }
  0x6a   : > { %v629_v24 = vrot.slane %v628_v13, 4  ;;  %v590_v1 = vrot.slane %v588_v18, 4  ;;  %v593_v7 = vrot.slane %v591_v6, 5  ;;  %v607_v22 = vshll.u32 %v2496_v53, 16 }
  0x6b   : > { %3490 = vst [vmem:[#allocation22_spill] sm:$0xff] %v2500_v54  ;;  %1038 = vrot.lane.b32.xlu2 %v2500_v54, %s2099_s4  ;;  %v624_v59 = vsel %vm2223_vm2, %v619_v17, %v623_v47  ;;  %v599_v33 = vrot.slane %v597_v31, 5  ;;  %v603_v63 = vrot.slane %v601_v15, 4  ;;  %v1895_v47 = vrot.slane %v2285_v49, 9  ;;  %v235_v54 = vld [vmem:[%s2188_s30 + $0x178] sm:$0x3] }
  0x6c   : > { %v634_v48 = vsel %vm2223_vm2, %v629_v24, %v633_v16  ;;  %v988_v42 = vunpack.c.l.b16 %v624_v59  ;;  %v594_v28 = vor.u32 %v593_v7, %v590_v1  ;;  %v609_v13 = vrot.slane %v607_v22, 5  ;;  %v233_v22 = vld [vmem:[%s2188_s30 + $0x168] sm:$0xff] }
  0x6d   : > { %v989_v23 = vunpack.c.l.b16 %v634_v48  ;;  %v604_v56 = vor.u32 %v603_v63, %v599_v33  ;;  %v743_v18 = vrot.slane %v2296_v62, 5  ;;  %v746_v16 = vrot.slane %v2298_v14, 5 }
  0x6e   : > { %v595_v6 = vrot.slane %v594_v28, 4  ;;  %v1894_v17 = vrot.slane %v2227_v37, 9  ;;  %v736_v31 = vrot.slane %v2229_v38, 5  ;;  %v234_v28 = vld [vmem:[%s2188_s30 + $0x170] sm:$0xff]  ;;  %v2545_v38 = vpack.c.bf16 %v235_v54, %v235_v54 }
  0x6f   : > { %v2521_v15 = vpack.c.b16 %v989_v23, %v988_v42  ;;  %v605_v24 = vrot.slane %v604_v56, 4  ;;  %v744_v1 = vsel %vm2512_vm5, %v1895_v47, %v743_v18  ;;  %v745_v7 = vrot.slane %v743_v18, 4 }
  0x70   : > { %v600_v59 = vsel %vm2223_vm2, %v595_v6, %v599_v33  ;;  %v1044_v63 = vunpack.c.l.b16 %v744_v1  ;;  %v737_v48 = vsel %vm2512_vm5, %v1894_v17, %v736_v31  ;;  %v738_v14 = vrot.slane %v736_v31, 4 }
  0x71   : > { %3493 = vst [vmem:[#allocation23_spill] sm:$0xff] %v2521_v15  ;;  %1036 = vrot.lane.b32.xlu1 %v2521_v15, %s2099_s4  ;;  %v610_v42 = vsel %vm2223_vm2, %v605_v24, %v609_v13  ;;  %v986_v23 = vunpack.c.l.b16 %v600_v59  ;;  %v747_v56 = vsel %vm2512_vm5, %v745_v7, %v746_v16  ;;  %v739_v47 = vrot.slane %v2231_v39, 5 }
  0x72   : > { %v987_v33 = vunpack.c.l.b16 %v610_v42  ;;  %v1045_v18 = vunpack.c.l.b16 %v747_v56  ;;  %v1042_v6 = vunpack.c.l.b16 %v737_v48  ;;  %v2539_v1 = vpack.c.bf16 %v233_v22, %v233_v22 }
  0x73   : > { %v740_v17 = vsel %vm2512_vm5, %v738_v14, %v739_v47  ;;  %v2543_v31 = vpack.c.bf16 %v234_v28, %v234_v28  ;;  %v1898_v13 = vrot.slane %v2193_v3, 9  ;;  %v679_v14 = vshll.u32 %v2545_v38, 16 }
  0x74   : > { %v2548_v24 = vpack.c.b16 %v987_v33, %v986_v23  ;;  %v2550_v59 = vpack.c.b16 %v1045_v18, %v1044_v63  ;;  %v1043_v16 = vunpack.c.l.b16 %v740_v17  ;;  %v660_v39 = vshrl.u32 %v2539_v1, 16 }
  0x75   : > { %v663_v7 = vshll.u32 %v2539_v1, 16  ;;  %v669_v22 = vshll.u32 %v2543_v31, 16  ;;  %v673_v48 = vshrl.u32 %v2543_v31, 16  ;;  %v764_v28 = vrot.slane %v2195_v4, 5 }
  0x76   : > { %3494 = vst [vmem:[#allocation24_spill] sm:$0xff] %v2548_v24  ;;  %1034 = vrot.lane.b32.xlu0 %v2548_v24, %s2099_s4  ;;  %1092 = vrot.lane.b32.xlu2 %v2550_v59, %s2100_s5  ;;  %v1074_v54 = vpack.c.b16 %v1043_v16, %v1042_v6  ;;  %v662_v63 = vrot.slane %v660_v39, 4  ;;  %v767_v42 = vrot.slane %v2197_v5, 5  ;;  %v681_v33 = vrot.slane %v679_v14, 5 }
  0x77   : > { %3495 = vst [vmem:[#allocation25_spill] sm:$0xff] %v2550_v59  ;;  %v665_v23 = vrot.slane %v663_v7, 5  ;;  %v671_v56 = vrot.slane %v669_v22, 5  ;;  %v675_v47 = vrot.slane %v673_v48, 4  ;;  %v765_v18 = vsel %vm2512_vm5, %v1898_v13, %v764_v28 }
  0x78   : > { %v766_v17 = vrot.slane %v764_v28, 4  ;;  %v1897_v24 = vrot.slane %v2276_v40, 9  ;;  %v757_v37 = vrot.slane %v2278_v44, 5  ;;  %v1050_v39 = vunpack.c.l.b16 %v765_v18 }
  0x79   : > { %1090 = vrot.lane.b32.xlu1 %v1074_v54, %s2100_s5  ;;  %v666_v6 = vor.u32 %v665_v23, %v662_v63  ;;  %v676_v16 = vor.u32 %v675_v47, %v671_v56  ;;  %v760_v59 = vrot.slane %v2280_v45, 5  ;;  %v1896_v13 = vrot.slane %v2202_v9, 9 }
  0x7a   : > { %v768_v5 = vsel %vm2512_vm5, %v766_v17, %v767_v42  ;;  %v758_v7 = vsel %vm2512_vm5, %v1897_v24, %v757_v37  ;;  %v759_v22 = vrot.slane %v757_v37, 4  ;;  %v750_v63 = vrot.slane %v2204_v10, 5 }
  0x7b   : > { %v667_v48 = vrot.slane %v666_v6, 4  ;;  %v677_v14 = vrot.slane %v676_v16, 4  ;;  %v1051_v28 = vunpack.c.l.b16 %v768_v5  ;;  %v1048_v15 = vunpack.c.l.b16 %v758_v7 }
  0x7c   : > { %v761_v54 = vsel %vm2512_vm5, %v759_v22, %v760_v59  ;;  %v753_v45 = vrot.slane %v2206_v11, 5  ;;  %v1901_v23 = vrot.slane %v2339_v20, 9  ;;  %v751_v59 = vsel %vm2512_vm5, %v1896_v13, %v750_v63 }
  0x7d   : > { %v672_v42 = vsel %vm2223_vm2, %v667_v48, %v671_v56  ;;  %v682_v37 = vsel %vm2223_vm2, %v677_v14, %v681_v33  ;;  %v2583_v24 = vpack.c.b16 %v1051_v28, %v1050_v39  ;;  %v1049_v47 = vunpack.c.l.b16 %v761_v54 }
  0x7e   : > { %v992_v18 = vunpack.c.l.b16 %v672_v42  ;;  %v993_v17 = vunpack.c.l.b16 %v682_v37  ;;  %v752_v6 = vrot.slane %v750_v63, 4  ;;  %v1046_v16 = vunpack.c.l.b16 %v751_v59 }
  0x7f   : > { %1098 = vrot.lane.b32.xlu2 %v2583_v24, %s2100_s5  ;;  %v2589_v11 = vpack.c.b16 %v1049_v47, %v1048_v15  ;;  %v785_v56 = vrot.slane %v2341_v21, 5  ;;  %v788_v5 = vrot.slane %v2343_v25, 5  ;;  %v1900_v7 = vrot.slane %v2345_v26, 9 }
  0x80   : > { %v2593_v33 = vpack.c.b16 %v993_v17, %v992_v18  ;;  %v754_v39 = vsel %vm2512_vm5, %v752_v6, %v753_v45  ;;  %v778_v22 = vrot.slane %v2363_v60, 5  ;;  %v781_v14 = vrot.slane %v2365_v61, 5 }
  0x81   : > { %1096 = vrot.lane.b32.xlu1 %v2589_v11, %s2100_s5  ;;  %v1047_v13 = vunpack.c.l.b16 %v754_v39  ;;  %v786_v15 = vsel %vm2512_vm5, %v1901_v23, %v785_v56  ;;  %v787_v48 = vrot.slane %v785_v56, 4  ;;  %v1899_v63 = vrot.slane %v2249_v2, 9 }
  0x82   : > { %1040 = vrot.lane.b32.xlu0 %v2593_v33, %s2099_s4  ;;  %v1056_v25 = vunpack.c.l.b16 %v786_v15  ;;  %v779_v28 = vsel %vm2512_vm5, %v1900_v7, %v778_v22  ;;  %v780_v54 = vrot.slane %v778_v22, 4  ;;  %v771_v37 = vrot.slane %v2253_v8, 5 }
  0x83   : > { %v789_v45 = vsel %vm2512_vm5, %v787_v48, %v788_v5  ;;  %v1054_v42 = vunpack.c.l.b16 %v779_v28  ;;  %v774_v47 = vrot.slane %v2255_v12, 5  ;;  %v1904_v18 = vrot.slane %v2405_v41, 9 }
  0x84   : > { %v1057_v23 = vunpack.c.l.b16 %v789_v45  ;;  %v782_v61 = vsel %vm2512_vm5, %v780_v54, %v781_v14  ;;  %v2616_v17 = vpack.c.b16 %v1047_v13, %v1046_v16  ;;  %v773_v6 = vrot.slane %v771_v37, 4 }
  0x85   : > { %v1055_v59 = vunpack.c.l.b16 %v782_v61  ;;  %v806_v56 = vrot.slane %v2407_v50, 5  ;;  %v772_v5 = vsel %vm2512_vm5, %v1899_v63, %v771_v37  ;;  %v809_v7 = vrot.slane %v2409_v52, 5 }
  0x86   : > { %v2619_v39 = vpack.c.b16 %v1057_v23, %v1056_v25  ;;  %v1903_v22 = vrot.slane %v2414_v57, 9  ;;  %v775_v12 = vsel %vm2512_vm5, %v773_v6, %v774_v47  ;;  %v799_v14 = vrot.slane %v2428_v29, 5 }
  0x87   : > { %v2625_v15 = vpack.c.b16 %v1055_v59, %v1054_v42  ;;  %v807_v16 = vsel %vm2512_vm5, %v1904_v18, %v806_v56  ;;  %v808_v13 = vrot.slane %v806_v56, 4  ;;  %v802_v25 = vrot.slane %v2430_v51, 5 }
  0x88   : > { %1104 = vrot.lane.b32.xlu2 %v2619_v39, %s2100_s5  ;;  %v1062_v48 = vunpack.c.l.b16 %v807_v16  ;;  %v1052_v52 = vunpack.c.l.b16 %v772_v5  ;;  %v1053_v28 = vunpack.c.l.b16 %v775_v12  ;;  %v792_v63 = vrot.slane %v2318_v43, 5 }
  0x89   : > { %1102 = vrot.lane.b32.xlu1 %v2625_v15, %s2100_s5  ;;  %v810_v54 = vsel %vm2512_vm5, %v808_v13, %v809_v7  ;;  %v800_v42 = vsel %vm2512_vm5, %v1903_v22, %v799_v14  ;;  %v801_v37 = vrot.slane %v799_v14, 4  ;;  %v1902_v51 = vrot.slane %v2314_v32, 9 }
  0x8a   : > { %1094 = vrot.lane.b32.xlu0 %v2616_v17, %s2100_s5  ;;  %v1063_v45 = vunpack.c.l.b16 %v810_v54  ;;  %v1060_v23 = vunpack.c.l.b16 %v800_v42  ;;  %v794_v61 = vrot.slane %v792_v63, 4  ;;  %v795_v47 = vrot.slane %v2320_v46, 5 }
  0x8b   : > { %v1907_v18 = vrot.slane %v2471_v34, 9  ;;  %v803_v6 = vsel %vm2512_vm5, %v801_v37, %v802_v25  ;;  %v827_v56 = vrot.slane %v2473_v30, 5  ;;  %v830_v7 = vrot.slane %v2475_v55, 5 }
  0x8c   : > { %v2647_v59 = vpack.c.b16 %v1063_v45, %v1062_v48  ;;  %v1061_v5 = vunpack.c.l.b16 %v803_v6  ;;  %v1906_v22 = vrot.slane %v2477_v27, 9  ;;  %v2654_v12 = vpack.c.b16 %v1053_v28, %v1052_v52 }
  0x8d   : > { %v828_v16 = vsel %vm2512_vm5, %v1907_v18, %v827_v56  ;;  %v829_v46 = vrot.slane %v827_v56, 4  ;;  %v820_v13 = vrot.slane %v2494_v0, 5  ;;  %v793_v14 = vsel %vm2512_vm5, %v1902_v51, %v792_v63  ;;  %v3496_v18 = vld [vmem:[#allocation12_spill] sm:$0xff] }
  0x8e   : > { %v2659_v48 = vpack.c.b16 %v1061_v5, %v1060_v23  ;;  %v796_v25 = vsel %vm2512_vm5, %v794_v61, %v795_v47  ;;  %v823_v55 = vrot.slane %v2496_v53, 5  ;;  %v1068_v28 = vunpack.c.l.b16 %v828_v16  ;;  %v3497_v5 = vld [vmem:[#allocation14_spill] sm:$0xff] }
  0x8f   : > { %v831_v52 = vsel %vm2512_vm5, %v829_v46, %v830_v7  ;;  %v821_v54 = vsel %vm2512_vm5, %v1906_v22, %v820_v13  ;;  %v822_v45 = vrot.slane %v820_v13, 4  ;;  %v813_v37 = vrot.slane %v2382_v36, 5 }
  0x90   : > { %1110 = vrot.lane.b32.xlu2 %v2647_v59, %s2100_s5  ;;  %v1069_v63 = vunpack.c.l.b16 %v831_v52  ;;  %v1066_v42 = vunpack.c.l.b16 %v821_v54  ;;  %v1058_v53 = vunpack.c.l.b16 %v793_v14  ;;  %v1059_v51 = vunpack.c.l.b16 %v796_v25 }
  0x91   : > { %1108 = vrot.lane.b32.xlu1 %v2659_v48, %s2100_s5  ;;  %v824_v23 = vsel %vm2512_vm5, %v822_v45, %v823_v55  ;;  %v1909_v61 = vrot.slane %v2539_v1, 9  ;;  %v1905_v6 = vrot.slane %v3496_v18, 9  ;;  %v815_v56 = vrot.slane %v813_v37, 4 }
  0x92   : > { %1100 = vrot.lane.b32.xlu0 %v2654_v12, %s2100_s5  ;;  %v1067_v47 = vunpack.c.l.b16 %v824_v23  ;;  %v816_v7 = vrot.slane %v3497_v5, 5  ;;  %v2682_v22 = vpack.c.b16 %v1069_v63, %v1068_v28  ;;  %v841_v16 = vrot.slane %v2543_v31, 5  ;;  %v3498_v28 = vld [vmem:[#allocation19_spill] sm:$0xff] }
  0x93   : > { %v844_v46 = vrot.slane %v2545_v38, 5  ;;  %v2688_v14 = vpack.c.b16 %v1059_v51, %v1058_v53  ;;  %v814_v52 = vsel %vm2512_vm5, %v1905_v6, %v813_v37  ;;  %v834_v45 = vrot.slane %v3498_v28, 5 }
  0x94   : > { %v2686_v13 = vpack.c.b16 %v1067_v47, %v1066_v42  ;;  %v842_v25 = vsel %vm2512_vm5, %v1909_v61, %v841_v16  ;;  %v843_v55 = vrot.slane %v841_v16, 4  ;;  %v817_v54 = vsel %vm2512_vm5, %v815_v56, %v816_v7  ;;  %v3499_v61 = vld [vmem:[#allocation18_spill] sm:$0xff]  ;;  %v3500_v56 = vld [vmem:[#allocation20_spill] sm:$0xff]  ;;  %v2711_v7 = vpop.permute.xlu2 %1018 }
  0x95   : > { %v916_v38 = vunpack.c.l.b16 %v2285_v49  ;;  %v917_v63 = vunpack.c.l.b16 %v2296_v62  ;;  %v1072_v53 = vunpack.c.l.b16 %v842_v25  ;;  %v1064_v51 = vunpack.c.l.b16 %v814_v52 }
  0x96   : > { %v845_v42 = vsel %vm2512_vm5, %v843_v55, %v844_v46  ;;  %v1065_v23 = vunpack.c.l.b16 %v817_v54  ;;  %v1908_v47 = vrot.slane %v3499_v61, 9  ;;  %v836_v6 = vrot.slane %v834_v45, 4 }
  0x97   : > { %v1073_v37 = vunpack.c.l.b16 %v845_v42  ;;  %v837_v49 = vrot.slane %v3500_v56, 5  ;;  %v947_v5 = vpack.c.b16 %v917_v63, %v916_v38  ;;  %v922_v55 = vunpack.c.l.b16 %v2193_v3 }
  0x98   : > { %1116 = vrot.lane.b32.xlu2 %v2682_v22, %s2100_s5  ;;  %v2713_v16 = vpack.c.b16 %v1065_v23, %v1064_v51  ;;  %v835_v46 = vsel %vm2512_vm5, %v1908_v47, %v834_v45  ;;  %v923_v52 = vunpack.c.l.b16 %v2195_v4  ;;  %v920_v38 = vunpack.c.l.b16 %v2276_v40 }
  0x99   : > { %1114 = vrot.lane.b32.xlu1 %v2686_v13, %s2100_s5  ;;  %v2709_v62 = vpack.c.b16 %v1073_v37, %v1072_v53  ;;  %v838_v25 = vsel %vm2512_vm5, %v836_v6, %v837_v49  ;;  %v1070_v54 = vunpack.c.l.b16 %v835_v46  ;;  %v921_v63 = vunpack.c.l.b16 %v2278_v44 }
  0x9a   : > { %1106 = vrot.lane.b32.xlu0 %v2688_v14, %s2100_s5  ;;  %v1071_v45 = vunpack.c.l.b16 %v838_v25  ;;  %v940_v42 = vunpack.c.l.b16 %v2471_v34  ;;  %v941_v53 = vunpack.c.l.b16 %v2473_v30  ;;  %v938_v3 = vunpack.c.l.b16 %v2477_v27 }
  0x9b   : > { %v939_v4 = vunpack.c.l.b16 %v2494_v0  ;;  %v2732_v37 = vpack.c.b16 %v923_v52, %v922_v55  ;;  %v2736_v23 = vpack.c.b16 %v921_v63, %v920_v38  ;;  %v928_v34 = vunpack.c.l.b16 %v2339_v20 }
  0x9c   : > { %v2734_v51 = vpack.c.b16 %v941_v53, %v940_v42  ;;  %v2740_v44 = vpack.c.b16 %v1071_v45, %v1070_v54  ;;  %v2742_v47 = vpop.permute.xlu2 %1020  ;;  %v929_v30 = vunpack.c.l.b16 %v2341_v21  ;;  %v926_v0 = vunpack.c.l.b16 %v2345_v26 }
  0x9d   : > { %v2738_v40 = vpack.c.b16 %v939_v4, %v938_v3  ;;  %v927_v27 = vunpack.c.l.b16 %v2363_v60  ;;  %v918_v6 = vunpack.c.l.b16 %v2202_v9  ;;  %v919_v56 = vunpack.c.l.b16 %v2204_v10 }
  0x9e   : > { %v944_v49 = vunpack.c.l.b16 %v2539_v1  ;;  %v945_v20 = vunpack.c.l.b16 %v2543_v31  ;;  %v2758_v46 = vpack.c.b16 %v929_v30, %v928_v34  ;;  %v934_v9 = vunpack.c.l.b16 %v2405_v41 }
  0x9f   : > { %v2762_v25 = vpack.c.b16 %v927_v27, %v926_v0  ;;  %v2766_v60 = vpack.c.b16 %v919_v56, %v918_v6  ;;  %v935_v10 = vunpack.c.l.b16 %v2407_v50  ;;  %v932_v1 = vunpack.c.l.b16 %v2414_v57 }
  0xa0   : > { %1125 = vrot.lane.b32.xlu2 %v947_v5, %s2101_s6  ;;  %v2760_v21 = vpack.c.b16 %v945_v20, %v944_v49  ;;  %v933_v31 = vunpack.c.l.b16 %v2428_v29  ;;  %v924_v52 = vunpack.c.l.b16 %v2249_v2  ;;  %v925_v41 = vunpack.c.l.b16 %v2253_v8  ;;  %v236_v2 = vld [vmem:[%s2188_s30 + $0x180] sm:$0xff]  ;;  %v237_v8 = vld [vmem:[%s2188_s30 + $0x188] sm:$0xff] }
  0xa1   : > { %1120 = vrot.lane.b32.xlu1 %v2709_v62, %s2100_s5  ;;  %v2782_v54 = vpack.c.b16 %v935_v10, %v934_v9  ;;  %v2786_v38 = vpop.permute.xlu1 %1014  ;;  %v930_v45 = vunpack.c.l.b16 %v2314_v32  ;;  %v931_v42 = vunpack.c.l.b16 %v2318_v43  ;;  %v2803_v3 = vpack.c.bf16 %v236_v2, %v236_v2 }
  0xa2   : > { %1112 = vrot.lane.b32.xlu0 %v2713_v16, %s2100_s5  ;;  %v2784_v50 = vpack.c.b16 %v933_v31, %v932_v1  ;;  %v2788_v63 = vpack.c.b16 %v925_v41, %v924_v52  ;;  %v2805_v4 = vpack.c.bf16 %v237_v8, %v237_v8  ;;  %v942_v32 = vunpack.c.l.b16 %v3499_v61 }
  0xa3   : > { %v2807_v34 = vpack.c.b16 %v931_v42, %v930_v45  ;;  %v1122_v30 = vunpack.c.l.b16 %v2803_v3  ;;  %v943_v43 = vunpack.c.l.b16 %v3498_v28  ;;  %v936_v27 = vunpack.c.l.b16 %v3496_v18  ;;  %v3501_v18 = vld [vmem:[#allocation8_spill] sm:$0xff]  ;;  %v3503_v45 = vld [vmem:[#allocation21_spill] sm:$0xff]  ;;  %v3504_v42 = vld [vmem:[#allocation23_spill] sm:$0xff] }
  0xa4   : > { %v2776_v55 = vpop.permute.xlu2 %1026  ;;  %v1123_v0 = vunpack.c.l.b16 %v2805_v4  ;;  %v937_v6 = vunpack.c.l.b16 %v2382_v36  ;;  %v1347_v41 = vsel %vm1332_vm6, %v2732_v37, %v2711_v7 }
  0xa5   : > { %v960_v49 = vpack.c.b16 %v943_v43, %v942_v32  ;;  %v3506_v43 = vld [vmem:[#allocation6_spill] sm:$0xff] }
  0xa6   : > { %v2764_v26 = vpop.permute.xlu0 %1010  ;;  %v2823_v56 = vpack.c.b16 %v1123_v0, %v1122_v30  ;;  %v2825_v9 = vpack.c.b16 %v937_v6, %v936_v27  ;;  %v3505_v0 = vld [vmem:[#allocation5_spill] sm:$0xff]  ;;  %v915_v27 = vunpack.c.l.b16 %v3506_v43 }
  0xa7   : > { %v914_v32 = vunpack.c.l.b16 %v3505_v0 }
  0xa8   : > { %1131 = vrot.lane.b32.xlu2 %v2732_v37, %s2101_s6 }
  0xa9   : > { %1129 = vrot.lane.b32.xlu1 %v2736_v23, %s2101_s6 }
  0xaa   : > { %1118 = vrot.lane.b32.xlu0 %v2740_v44, %s2100_s5 }
  0xb0   : > { %1137 = vrot.lane.b32.xlu2 %v2758_v46, %s2101_s6 }
  0xb1   : > { %1135 = vrot.lane.b32.xlu1 %v2762_v25, %s2101_s6 }
  0xb2   : > { %1127 = vrot.lane.b32.xlu0 %v2766_v60, %s2101_s6 }
  0xb5   : > { %v2801_v53 = vpop.permute.xlu2 %1032 }
  0xb7   : > { %v1013_v57 = vpop.permute.xlu0 %1012 }
  0xb8   : > { %1143 = vrot.lane.b32.xlu2 %v2782_v54, %s2101_s6  ;;  %v1338_v29 = vsel %vm1332_vm6, %v947_v5, %v1013_v57  ;;  %v2809_v5 = vpop.permute.xlu1 %1016 }
  0xb9   : > { %1141 = vrot.lane.b32.xlu1 %v2784_v50, %s2101_s6 }
  0xba   : > { %1133 = vrot.lane.b32.xlu0 %v2788_v63, %s2101_s6 }
  0xc0   : > { %1149 = vrot.lane.b32.xlu2 %v2734_v51, %s2101_s6 }
  0xc1   : > { %1147 = vrot.lane.b32.xlu1 %v2738_v40, %s2101_s6 }
  0xc2   : > { %1139 = vrot.lane.b32.xlu0 %v2807_v34, %s2101_s6  ;;  %v1025_v28 = vpop.permute.xlu1 %1024 }
  0xc3   : > { %v1356_v7 = vsel %vm1332_vm6, %v2758_v46, %v1025_v28 }
  0xc5   : > { %v1039_v20 = vpop.permute.xlu2 %1038 }
  0xc6   : > { %v2828_v61 = vsel %vm1332_vm6, %v960_v49, %v1039_v20 }
  0xc8   : > { %1155 = vrot.lane.b32.xlu2 %v2823_v56, %s2101_s6  ;;  %v1023_v52 = vpop.permute.xlu0 %1022 }
  0xc9   : > { %1153 = vrot.lane.b32.xlu1 %v2760_v21, %s2101_s6 }
  0xca   : > { %1145 = vrot.lane.b32.xlu0 %v2825_v9, %s2101_s6 }
  0xd0   : > { %1176 = vrot.lane.b32.xlu2 %v2482_v19, %s2102_s7  ;;  %v1093_v36 = vpop.permute.xlu2 %1092 }
  0xd1   : > { %1162 = vrot.lane.b32.xlu1 %v3501_v18, %s2102_s7  ;;  %v2841_v10 = vsel %vm1381_vm7, %v1338_v29, %v1093_v36  ;;  %v3502_v29 = vld [vmem:[#allocation11_spill] sm:$0xff]  ;;  %v946_v36 = vpack.c.b16 %v915_v27, %v914_v32 }
  0xd2   : > { %1151 = vrot.lane.b32.xlu0 %v960_v49, %s2101_s6  ;;  %s3295_s6 = scalar_lea.vmem [#allocation2], %s1892_s29 }
  0xd3   : > { %v1031_v1 = vpop.permute.xlu1 %1030 }
  0xd4   : > { %v1365_v31 = vsel %vm1332_vm6, %v2782_v54, %v1031_v1  ;;  %v1335_v1 = vsel %vm1332_vm6, %v946_v36, %v2764_v26  ;;  %v1344_v26 = vsel %vm1332_vm6, %v2736_v23, %v2809_v5  ;;  %v1353_v5 = vsel %vm1332_vm6, %v2762_v25, %v1023_v52 }
  0xd8   : > { %1219 = vrot.lane.b32.xlu2 %v2682_v22, %s2103_s8  ;;  %v1029_v8 = vpop.permute.xlu0 %1028 }
  0xd9   : > { %1211 = vrot.lane.b32.xlu1 %v2659_v48, %s2103_s8  ;;  %v1099_v57 = vpop.permute.xlu2 %1098  ;;  %v1362_v52 = vsel %vm1332_vm6, %v2784_v50, %v1029_v8 }
  0xda   : > { %1160 = vrot.lane.b32.xlu0 %v3502_v29, %s2102_s7  ;;  %v2856_v2 = vsel %vm1381_vm7, %v1347_v41, %v1099_v57 }
  0xe0   : > { %1281 = vrot.lane.b32.xlu2 %v3503_v45, %s2104_s9 }
  0xe1   : > { %1254 = vrot.lane.b32.xlu1 %v960_v49, %s2105_s10 }
  0xe2   : > { %1184 = vrot.lane.b32.xlu0 %v3504_v42, %s2102_s7  ;;  %v1105_v30 = vpop.permute.xlu2 %1104 }
  0xe3   : > { %v1037_v6 = vpop.permute.xlu1 %1036  ;;  %v2868_v20 = vsel %vm1381_vm7, %v1356_v7, %v1105_v30  ;;  %v3507_v7 = vld [vmem:[#allocation25_spill] sm:$0xff]  ;;  %v3508_v30 = vld [vmem:[#allocation22_spill] sm:$0xff] }
  0xe8   : > { %1324 = vrot.lane.b32.xlu2 %v2740_v44, %s2106_s11  ;;  %v1035_v49 = vpop.permute.xlu0 %1034 }
  0xe9   : > { %1316 = vrot.lane.b32.xlu1 %v2647_v59, %s2106_s11 }
  0xea   : > { %1246 = vrot.lane.b32.xlu0 %v2782_v54, %s2105_s10  ;;  %v1111_v28 = vpop.permute.xlu2 %1110  ;;  %v1374_v54 = vsel %vm1332_vm6, %v2734_v51, %v1037_v6  ;;  %v3509_v6 = vld [vmem:[#allocation9_spill] sm:$0xff] }
  0xeb   : > { %v2879_v41 = vsel %vm1381_vm7, %v1365_v31, %v1111_v28  ;;  %v1091_v57 = vpop.permute.xlu1 %1090 }
  0xec   : > { %v1383_v29 = vsel %vm1381_vm7, %v1335_v1, %v1091_v57  ;;  %v1341_v57 = vsel %vm1332_vm6, %v2766_v60, %v2786_v38 }
  0xf0   : > { %1203 = vrot.lane.b32.xlu2 %v2654_v12, %s2103_s8 }
  0xf1   : > { %1195 = vrot.lane.b32.xlu1 %v3507_v7, %s2103_s8 }
  0xf2   : > { %1289 = vrot.lane.b32.xlu0 %v3508_v30, %s2104_s9  ;;  %v1117_v0 = vpop.permute.xlu2 %1116 }
  0xf3   : > { %v2894_v31 = vsel %vm1381_vm7, %v1374_v54, %v1117_v0  ;;  %v1097_v32 = vpop.permute.xlu1 %1096  ;;  %v1350_v0 = vsel %vm1332_vm6, %v2788_v63, %v2742_v47 }
  0xf4   : > { %v1041_v43 = vpop.permute.xlu0 %1040  ;;  %v1389_v27 = vsel %vm1381_vm7, %v1344_v26, %v1097_v32 }
  0xf8   : > { %1265 = vrot.lane.b32.xlu2 %v3501_v18, %s2104_s9 }
  0xf9   : > { %1238 = vrot.lane.b32.xlu1 %v2762_v25, %s2105_s10 }
  0xfa   : > { %1168 = vrot.lane.b32.xlu0 %v3509_v6, %s2102_s7  ;;  %v1126_v36 = vpop.permute.xlu2 %1125 }
  0xfb   : > { %v2906_v28 = vsel %vm1414_vm8, %v1383_v29, %v1126_v36  ;;  %v1103_v1 = vpop.permute.xlu1 %1102 }
  0xfc   : > { %v1095_v18 = vpop.permute.xlu0 %1094  ;;  %v1395_v7 = vsel %vm1381_vm7, %v1353_v5, %v1103_v1  ;;  %v1359_v1 = vsel %vm1332_vm6, %v2807_v34, %v2776_v55  ;;  %v1380_v55 = vsel %vm1332_vm6, %v2760_v21, %v1041_v43 }
  0xfd   : > { %v1387_v54 = vsel %vm1381_vm7, %v1341_v57, %v1095_v18 }
 0x100   : > { %1308 = vrot.lane.b32.xlu2 %v2625_v15, %s2106_s11 }
 0x101   : > { %1300 = vrot.lane.b32.xlu1 %v2616_v17, %s2106_s11 }
 0x102   : > { %1230 = vrot.lane.b32.xlu0 %v2766_v60, %s2105_s10  ;;  %v1132_v25 = vpop.permute.xlu2 %1131  ;;  %v3510_v60 = vld [vmem:[#allocation16_spill] sm:$0xff] }
 0x103   : > { %v2922_v38 = vsel %vm1414_vm8, %v1389_v27, %v1132_v25  ;;  %v1109_v29 = vpop.permute.xlu1 %1108  ;;  %v1371_v27 = vsel %vm1332_vm6, %v2738_v40, %v1035_v49  ;;  %v1368_v25 = vsel %vm1332_vm6, %v2825_v9, %v2801_v53 }
 0x104   : > { %v1101_v26 = vpop.permute.xlu0 %1100  ;;  %v1401_v32 = vsel %vm1381_vm7, %v1362_v52, %v1109_v29 }
 0x105   : > { %v1393_v36 = vsel %vm1381_vm7, %v1350_v0, %v1101_v26  ;;  %v3511_v26 = vld [vmem:[#allocation17_spill] sm:$0xff] }
 0x108   : > { %1213 = vrot.lane.b32.xlu2 %v2647_v59, %s2103_s8 }
 0x109   : > { %1186 = vrot.lane.b32.xlu1 %v3508_v30, %s2102_s7 }
 0x10a   : > { %1273 = vrot.lane.b32.xlu0 %v3510_v60, %s2104_s9  ;;  %v1138_v8 = vpop.permute.xlu2 %1137 }
 0x10b   : > { %v2938_v47 = vsel %vm1414_vm8, %v1395_v7, %v1138_v8  ;;  %v1115_v5 = vpop.permute.xlu1 %1114 }
 0x10c   : > { %v1107_v57 = vpop.permute.xlu0 %1106  ;;  %v2944_v59 = vsel %vm1381_vm7, %v1371_v27, %v1115_v5 }
 0x10d   : > { %v2947_v30 = vsel %vm1381_vm7, %v1359_v1, %v1107_v57  ;;  %v238_v1 = vld [vmem:[%s2188_s30 + $0x190] sm:$0x3]  ;;  %v856_v57 = vshll.u32 %v2805_v4, 16 }
 0x110   : > { %1256 = vrot.lane.b32.xlu2 %v2760_v21, %s2105_s10 }
 0x111   : > { %1248 = vrot.lane.b32.xlu1 %v2825_v9, %s2105_s10 }
 0x112   : > { %1178 = vrot.lane.b32.xlu0 %v3503_v45, %s2102_s7  ;;  %v1144_v49 = vpop.permute.xlu2 %1143 }
 0x113   : > { %v2958_v18 = vsel %vm1414_vm8, %v1401_v32, %v1144_v49  ;;  %v1121_v7 = vpop.permute.xlu1 %1120  ;;  %v3015_v49 = vpack.c.bf16 %v238_v1, %v238_v1  ;;  %v1616_v1 = vld [vmem:[%s3430_s1 + $0x10] sm:$0x3] }
 0x114   : > { %v1113_v52 = vpop.permute.xlu0 %1112  ;;  %v1413_v29 = vsel %vm1381_vm7, %v1380_v55, %v1121_v7  ;;  %v3512_v55 = vld [vmem:[#allocation15_spill] sm:$0xff] }
 0x115   : > { %v1405_v0 = vsel %vm1381_vm7, %v1368_v25, %v1113_v52  ;;  %v858_v52 = vrot.slane %v856_v57, 5 }
 0x118   : > { %1318 = vrot.lane.b32.xlu2 %v2713_v16, %s2106_s11 }
 0x119   : > { %1291 = vrot.lane.b32.xlu1 %v2593_v33, %s2104_s9 }
 0x11a   : > { %1221 = vrot.lane.b32.xlu0 %v2740_v44, %s2103_s8  ;;  %v2971_v21 = vpop.permute.xlu2 %1149 }
 0x11b   : > { %v1130_v45 = vpop.permute.xlu1 %1129 }
 0x11c   : > { %v1119_v43 = vpop.permute.xlu0 %1118  ;;  %v2974_v53 = vsel %vm1414_vm8, %v1387_v54, %v1130_v45 }
 0x11d   : > { %v1411_v9 = vsel %vm1381_vm7, %v2828_v61, %v1119_v43 }
 0x120   : > { %1197 = vrot.lane.b32.xlu2 %v2616_v17, %s2103_s8 }
 0x121   : > { %1170 = vrot.lane.b32.xlu1 %v3510_v60, %s2102_s7 }
 0x122   : > { %1283 = vrot.lane.b32.xlu0 %v3511_v26, %s2104_s9  ;;  %v1156_v44 = vpop.permute.xlu2 %1155 }
 0x123   : > { %v2985_v32 = vsel %vm1414_vm8, %v1413_v29, %v1156_v44  ;;  %v1136_v8 = vpop.permute.xlu1 %1135 }
 0x124   : > { %v1128_v54 = vpop.permute.xlu0 %1127  ;;  %v2988_v27 = vsel %vm1414_vm8, %v1393_v36, %v1136_v8  ;;  %v847_v36 = vshrl.u32 %v2803_v3, 16 }
 0x125   : > { %v2992_v61 = vsel %vm1414_vm8, %v2841_v10, %v1128_v54 }
 0x126   : > { %v849_v7 = vrot.slane %v847_v36, 4  ;;  %v866_v36 = vshll.u32 %v3015_v49, 16 }
 0x128   : > { %1240 = vrot.lane.b32.xlu2 %v2758_v46, %s2105_s10  ;;  %v850_v46 = vshll.u32 %v2803_v3, 16 }
 0x129   : > { %1232 = vrot.lane.b32.xlu1 %v2736_v23, %s2105_s10  ;;  %v860_v23 = vshrl.u32 %v2805_v4, 16 }
 0x12a   : > { %1326 = vrot.lane.b32.xlu0 %v2709_v62, %s2106_s11  ;;  %v3000_v17 = vpop.permute.xlu2 %1176  ;;  %v852_v25 = vrot.slane %v850_v46, 5 }
 0x12b   : > { %v3002_v60 = vpop.permute.xlu1 %1141 }
 0x12c   : > { %v1134_v5 = vpop.permute.xlu0 %1133  ;;  %v853_v54 = vor.u32 %v852_v25, %v849_v7 }
 0x12d   : > { %v3007_v10 = vsel %vm1414_vm8, %v2856_v2, %v1134_v5  ;;  %v862_v2 = vrot.slane %v860_v23, 4  ;;  %v3513_v23 = vld [vmem:[#allocation10_spill] sm:$0xff] }
 0x12f   : > { %v863_v5 = vor.u32 %v862_v2, %v858_v52 }
 0x130   : > { %1302 = vrot.lane.b32.xlu2 %v2589_v11, %s2106_s11 }
 0x131   : > { %1275 = vrot.lane.b32.xlu1 %v3512_v55, %s2104_s9  ;;  %v864_v57 = vrot.slane %v863_v5, 4  ;;  %v1942_v5 = vld [vmem:[%s3430_s1 + $0x8] sm:$0xff] }
 0x132   : > { %1205 = vrot.lane.b32.xlu0 %v2625_v15, %s2103_s8  ;;  %v3021_v29 = vpop.permute.xlu2 %1219  ;;  %v1630_v15 = vunpack.c.l.b16 %v1616_v1  ;;  %v1910_v1 = vrot.slane %v2803_v3, 9 }
 0x133   : > { %v1148_v45 = vpop.permute.xlu1 %1147 }
 0x134   : > { %v1140_v43 = vpop.permute.xlu0 %1139  ;;  %v3024_v44 = vsel %vm1414_vm8, %v1405_v0, %v1148_v45  ;;  %v1633_v46 = vpack.c.b16 %v1630_v15, %v1630_v15  ;;  %v854_v0 = vrot.slane %v853_v54, 4 }
 0x135   : > { %v3028_v8 = vsel %vm1414_vm8, %v2868_v20, %v1140_v43  ;;  %v868_v20 = vrot.slane %v866_v36, 5  ;;  %v875_v36 = vrot.slane %v2805_v4, 5 }
 0x136   : > { %v1671_v25 = vsel %vm1669_vm9, %v1633_v46, 0  ;;  %v859_v43 = vsel %vm2223_vm2, %v854_v0, %v858_v52  ;;  %v1941_v52 = vld [vmem:[%s3430_s1] sm:$0xff] }
 0x137   : > { %1945 = vmatpush.bf16.msra.mxu2 %v1671_v25  ;;  %1946 = vmatpush.bf16.msra.mxu3 %v1671_v25  ;;  %v869_v54 = vsel %vm2223_vm2, %v864_v57, %v868_v20  ;;  %v877_v15 = vrot.slane %v875_v36, 4  ;;  %v876_v3 = vsel %vm2512_vm5, %v1910_v1, %v875_v36  ;;  %v1440_v1 = vsel %vm1414_vm8, %v2944_v59, %v2971_v21 }
 0x138   : > { %1188 = vrot.lane.b32.xlu2 %v2593_v33, %s2102_s7  ;;  %1678 = vmatpush.bf16.msra.mxu0 %v1671_v25 }
 0x139   : > { %1180 = vrot.lane.b32.xlu1 %v3511_v26, %s2102_s7  ;;  %1944 = vmatpush.bf16.msra.mxu1 %v1671_v25  ;;  %v1192_v25 = vunpack.c.l.b16 %v876_v3 }
 0x13a   : > { %1267 = vrot.lane.b32.xlu0 %v3513_v23, %s2104_s9  ;;  %v3040_v7 = vpop.permute.xlu2 %1281 }
 0x13b   : > { %v1154_v2 = vpop.permute.xlu1 %1153  ;;  %1948 = vmatpush.bf16.msra.mxu2 %v1942_v5  ;;  %1949 = vmatpush.bf16.msra.mxu3 %v1942_v5 }
 0x13c   : > { %v1146_v45 = vpop.permute.xlu0 %1145  ;;  %v3043_v33 = vsel %vm1414_vm8, %v1411_v9, %v1154_v2  ;;  %v1157_v9 = vunpack.c.l.b16 %v859_v43  ;;  %1679 = vmatpush.bf16.msra.mxu0 %v1942_v5 }
 0x13d   : > { %v3047_v26 = vsel %vm1414_vm8, %v2879_v41, %v1146_v45  ;;  %v1158_v41 = vunpack.c.l.b16 %v869_v54  ;;  %1947 = vmatpush.bf16.msra.mxu1 %v1942_v5 }
 0x13f   : > { %1951 = vmatpush.bf16.msra.mxu2 %v1941_v52  ;;  %1952 = vmatpush.bf16.msra.mxu3 %v1941_v52  ;;  %v3074_v57 = vpack.c.b16 %v1158_v41, %v1157_v9  ;;  %v1432_v9 = vsel %vm1414_vm8, %v2947_v30, %v3002_v60 }
 0x140   : > { %1250 = vrot.lane.b32.xlu2 %v2738_v40, %s2105_s10  ;;  %v878_v40 = vrot.slane %v3015_v49, 5  ;;  %1680 = vmatpush.bf16.msra.mxu0 %v1941_v52 }
 0x141   : > { %1223 = vrot.lane.b32.xlu1 %v2709_v62, %s2103_s8  ;;  %1950 = vmatpush.bf16.msra.mxu1 %v1941_v52  ;;  %v239_v52 = vld [vmem:[%s2188_s30 + $0x198] sm:$0xff] }
 0x142   : > { %1310 = vrot.lane.b32.xlu0 %v2619_v39, %s2106_s11  ;;  %v3066_v4 = vpop.permute.xlu2 %1324  ;;  %v879_v49 = vsel %vm2512_vm5, %v877_v15, %v878_v40 }
 0x143   : > { %v1163_v46 = vpop.permute.xlu1 %1162  ;;  %v1193_v2 = vunpack.c.l.b16 %v879_v49 }
 0x144   : > { %v1152_v62 = vpop.permute.xlu0 %1151  ;;  %v3072_v0 = vsel %vm1447_vm10, %v2992_v61, %v1163_v46  ;;  %v3514_v61 = vld [vmem:[#allocation24_spill] sm:$0xff]  ;;  %v3515_v46 = vld [vmem:[#allocation7_spill] sm:$0xff] }
 0x145   : > { %v3078_v20 = vsel %vm1414_vm8, %v2894_v31, %v1152_v62  ;;  %v3094_v54 = vpack.c.b16 %v1193_v2, %v1192_v25 }
 0x148   : > { %1293 = vrot.lane.b32.xlu2 %v3074_v57, %s2104_s9 }
 0x149   : > { %1285 = vrot.lane.b32.xlu1 %v3514_v61, %s2104_s9 }
 0x14a   : > { %1215 = vrot.lane.b32.xlu0 %v2713_v16, %s2103_s8  ;;  %v3090_v31 = vpop.permute.xlu2 %1203 }
 0x14b   : > { %v1212_v45 = vpop.permute.xlu1 %1211 }
 0x14c   : > { %v3092_v43 = vpop.permute.xlu0 %1160 }
 0x150   : > { %1164 = vrot.lane.b32.xlu2 %v3513_v23, %s2102_s7  ;;  %v1465_v23 = vsel %vm1447_vm10, %v1432_v9, %v3000_v17  ;;  %v240_v17 = vld [vmem:[%s2188_s30 + $0x1a0] sm:$0xff] }
 0x151   : > { %1328 = vrot.lane.b32.xlu1 %v3094_v54, %s2106_s11  ;;  %v1498_v30 = vsel %vm1480_vm11, %v1465_v23, %v1212_v45  ;;  %v3139_v21 = vpack.c.bf16 %v240_v17, %v240_v17 }
 0x152   : > { %1258 = vrot.lane.b32.xlu0 %v2823_v56, %s2105_s10  ;;  %v3102_v5 = vpop.permute.xlu2 %1265 }
 0x153   : > { %v1255_v36 = vpop.permute.xlu1 %1254  ;;  %v890_v9 = vshll.u32 %v3139_v21, 16  ;;  %v894_v23 = vshrl.u32 %v3139_v21, 16 }
 0x154   : > { %v1185_v16 = vpop.permute.xlu0 %1184 }
 0x155   : > { %v1473_v40 = vsel %vm1447_vm10, %v1440_v1, %v1185_v16  ;;  %v241_v16 = vld [vmem:[%s2188_s30 + $0x1a8] sm:$0x3] }
 0x156   : > { %v1506_v62 = vsel %vm1480_vm11, %v1473_v40, %v3021_v29  ;;  %v295_v29 = vpack.c.bf16 %v241_v16, %v241_v16  ;;  %v1228_v40 = vunpack.c.l.b16 %v3139_v21 }
 0x157   : > { %v1539_v49 = vsel %vm1513_vm12, %v1506_v62, %v1255_v36 }
 0x158   : > { %1207 = vrot.lane.b32.xlu2 %v2619_v39, %s2103_s8 }
 0x159   : > { %1199 = vrot.lane.b32.xlu1 %v2589_v11, %s2103_s8 }
 0x15a   : > { %1320 = vrot.lane.b32.xlu0 %v2686_v13, %s2106_s11  ;;  %v3113_v56 = vpop.permute.xlu2 %1308 }
 0x15b   : > { %v1317_v41 = vpop.permute.xlu1 %1316 }
 0x15c   : > { %v1247_v60 = vpop.permute.xlu0 %1246 }
 0x15d   : > { %v1531_v39 = vsel %vm1513_vm12, %v1498_v30, %v1247_v60  ;;  %v892_v30 = vrot.slane %v890_v9, 5  ;;  %v896_v60 = vrot.slane %v894_v23, 4 }
 0x15e   : > { %v1564_v11 = vsel %vm1546_vm13, %v1531_v39, %v3040_v7  ;;  %v3133_v7 = vpack.c.bf16 %v239_v52, %v239_v52 }
 0x15f   : > { %v1597_v15 = vsel %vm1579_vm14, %v1564_v11, %v1317_v41  ;;  %v897_v1 = vor.u32 %v896_v60, %v892_v30 }
 0x160   : > { %1928 = vmatmul.msk.bf16.vlgmr.msra.gmra.mxu2 %vm1636_vm15, %v1597_v15  ;;  %1269 = vrot.lane.b32.xlu2 %v3515_v46, %s2104_s9  ;;  %v900_v15 = vshll.u32 %v295_v29, 16  ;;  %v1227_v17 = vunpack.c.l.b16 %v3133_v7 }
 0x161   : > { %1242 = vrot.lane.b32.xlu1 %v2807_v34, %s2105_s10  ;;  %v881_v34 = vshrl.u32 %v3133_v7, 16 }
 0x162   : > { %1172 = vrot.lane.b32.xlu0 %v3512_v55, %s2102_s7  ;;  %v3137_v59 = vpop.permute.xlu2 %1213  ;;  %v884_v55 = vshll.u32 %v3133_v7, 16 }
 0x163   : > { %v1196_v3 = vpop.permute.xlu1 %1195  ;;  %v883_v36 = vrot.slane %v881_v34, 4 }
 0x164   : > { %v1290_v25 = vpop.permute.xlu0 %1289  ;;  %v886_v41 = vrot.slane %v884_v55, 5  ;;  %v1229_v55 = vpack.c.b16 %v1228_v40, %v1227_v17 }
 0x165   : > { %v1572_v2 = vsel %vm1546_vm13, %v1539_v49, %v1290_v25  ;;  %v898_v49 = vrot.slane %v897_v1, 4  ;;  %v902_v25 = vrot.slane %v900_v15, 5  ;;  %v912_v15 = vrot.slane %v295_v29, 5 }
 0x166   : > { %v1605_v45 = vsel %vm1579_vm14, %v1572_v2, %v3066_v4  ;;  %v887_v52 = vor.u32 %v886_v41, %v883_v36  ;;  %v1449_v2 = vsel %vm1447_vm10, %v2906_v28, %v3092_v43 }
 0x167   : > { %1932 = vmatmul.msk.bf16.vlgmr.msra.gmra.mxu3 %vm1636_vm15, %v1605_v45  ;;  %v903_v36 = vsel %vm2223_vm2, %v898_v49, %v902_v25 }
 0x168   : > { %1312 = vrot.lane.b32.xlu2 %v2688_v14, %s2106_s11  ;;  %v888_v62 = vrot.slane %v887_v52, 4 }
 0x169   : > { %1304 = vrot.lane.b32.xlu1 %v2583_v24, %s2106_s11 }
 0x16a   : > { %1234 = vrot.lane.b32.xlu0 %v2732_v37, %s2105_s10  ;;  %v3159_v4 = vpop.permute.xlu2 %1256  ;;  %v3516_v37 = vld [vmem:[#allocation13_spill] sm:$0xff]  ;;  %v893_v23 = vsel %vm2223_vm2, %v888_v62, %v892_v30 }
 0x16b   : > { %v1239_v39 = vpop.permute.xlu1 %1238  ;;  %v1262_v43 = vunpack.c.l.b16 %v893_v23 }
 0x16c   : > { %v1169_v11 = vpop.permute.xlu0 %1168 }
 0x16d   : > { %v1457_v28 = vsel %vm1447_vm10, %v3007_v10, %v1169_v11 }
 0x16e   : > { %v1490_v35 = vsel %vm1480_vm11, %v1457_v28, %v3090_v31  ;;  %v1911_v31 = vrot.slane %v3133_v7, 9 }
 0x16f   : > { %v1523_v30 = vsel %vm1513_vm12, %v1490_v35, %v1239_v39 }
 0x170   : > { %1217 = vrot.lane.b32.xlu2 %v2686_v13, %s2103_s8  ;;  %v1482_v13 = vsel %vm1480_vm11, %v1449_v2, %v1196_v3 }
 0x171   : > { %1190 = vrot.lane.b32.xlu1 %v3074_v57, %s2102_s7 }
 0x172   : > { %1277 = vrot.lane.b32.xlu0 %v3516_v37, %s2104_s9  ;;  %v1319_v16 = vpop.permute.xlu2 %1318 }
 0x173   : > { %v1301_v34 = vpop.permute.xlu1 %1300 }
 0x174   : > { %v1231_v45 = vpop.permute.xlu0 %1230 }
 0x175   : > { %v1515_v9 = vsel %vm1513_vm12, %v1482_v13, %v1231_v45 }
 0x176   : > { %v1548_v57 = vsel %vm1546_vm13, %v1515_v9, %v3102_v5  ;;  %v1263_v5 = vunpack.c.l.b16 %v903_v36 }
 0x177   : > { %v1581_v41 = vsel %vm1579_vm14, %v1548_v57, %v1301_v34 }
 0x178   : > { %1920 = vmatmul.msk.bf16.vlgmr.msra.gmra.mxu0 %vm1636_vm15, %v1581_v41  ;;  %1260 = vrot.lane.b32.xlu2 %v1229_v55, %s2105_s10  ;;  %v1264_v11 = vpack.c.b16 %v1263_v5, %v1262_v43 }
 0x179   : > { %1252 = vrot.lane.b32.xlu1 %v2734_v51, %s2105_s10  ;;  %v909_v51 = vrot.slane %v3139_v21, 5 }
 0x17a   : > { %1182 = vrot.lane.b32.xlu0 %v3514_v61, %s2102_s7  ;;  %v1198_v1 = vpop.permute.xlu2 %1197 }
 0x17b   : > { %v1187_v3 = vpop.permute.xlu1 %1186  ;;  %v911_v39 = vrot.slane %v909_v51, 4 }
 0x17c   : > { %v1274_v60 = vpop.permute.xlu0 %1273 }
 0x17d   : > { %v1556_v10 = vsel %vm1546_vm13, %v1523_v30, %v1274_v60  ;;  %v913_v21 = vsel %vm2512_vm5, %v911_v39, %v912_v15 }
 0x17e   : > { %v1589_v52 = vsel %vm1579_vm14, %v1556_v10, %v3113_v56  ;;  %v910_v56 = vsel %vm2512_vm5, %v1911_v31, %v909_v51 }
 0x17f   : > { %1924 = vmatmul.msk.bf16.vlgmr.msra.gmra.mxu1 %vm1636_vm15, %v1589_v52 }
 0x180   : > { %1322 = vrot.lane.b32.xlu2 %v2682_v22, %s2106_s11  ;;  %v1297_v22 = vunpack.c.l.b16 %v910_v56 }
 0x181   : > { %1295 = vrot.lane.b32.xlu1 %v1264_v11, %s2104_s9 }
 0x182   : > { %1225 = vrot.lane.b32.xlu0 %v3094_v54, %s2103_s8  ;;  %v1241_v40 = vpop.permute.xlu2 %1240  ;;  %v1298_v54 = vunpack.c.l.b16 %v913_v21 }
 0x183   : > { %v1249_v61 = vpop.permute.xlu1 %1248 }
 0x184   : > { %v1179_v17 = vpop.permute.xlu0 %1178  ;;  %v1299_v62 = vpack.c.b16 %v1298_v54, %v1297_v22 }
 0x185   : > { %v1467_v49 = vsel %vm1447_vm10, %v2958_v18, %v1179_v17 }
 0x188   : > { %1174 = vrot.lane.b32.xlu2 %v3516_v37, %s2102_s7 }
 0x189   : > { %1166 = vrot.lane.b32.xlu1 %v3515_v46, %s2102_s7  ;;  %s1943_s7 = sshll.u32 %s2089_s15, 8  ;;  %s1795_s15 = scalar_lea.sflag [#allocation3], %s175_s28 }
 0x18a   : > { %1287 = vrot.lane.b32.xlu0 %v3504_v42, %s2104_s9  ;;  %v1303_v58 = vpop.permute.xlu2 %1302  ;;  %v1500_v42 = vsel %vm1480_vm11, %v1467_v49, %v3137_v59 }
 0x18b   : > { %v1292_v7 = vpop.permute.xlu1 %1291  ;;  %v1533_v37 = vsel %vm1513_vm12, %v1500_v42, %v1249_v61 }
 0x18c   : > { %v1222_v29 = vpop.permute.xlu0 %1221 }
 0x190   : > { %1236 = vrot.lane.b32.xlu2 %v2788_v63, %s2105_s10  ;;  %v1475_v63 = vsel %vm1447_vm10, %v3078_v20, %v1187_v3 }
 0x191   : > { %1209 = vrot.lane.b32.xlu1 %v2688_v14, %s2103_s8  ;;  %v1508_v14 = vsel %vm1480_vm11, %v1475_v63, %v1222_v29 }
 0x192   : > { %1330 = vrot.lane.b32.xlu0 %v1299_v62, %s2106_s11  ;;  %v1541_v59 = vsel %vm1513_vm12, %v1508_v14, %v3159_v4  ;;  %v1189_v20 = vpop.permute.xlu2 %1188  ;;  %v1484_v4 = vsel %vm1480_vm11, %v3072_v0, %v1198_v1 }
 0x193   : > { %v1171_v46 = vpop.permute.xlu1 %1170  ;;  %v1574_v13 = vsel %vm1546_vm13, %v1541_v59, %v1292_v7 }
 0x194   : > { %v1284_v25 = vpop.permute.xlu0 %1283 }
 0x195   : > { %v1566_v2 = vsel %vm1546_vm13, %v1533_v37, %v1284_v25 }
 0x196   : > { %v1599_v18 = vsel %vm1579_vm14, %v1566_v2, %v1319_v16 }
 0x197   : > { %1929 = vmatmul.msk.bf16.gmra.mxu2 %vm1636_vm15, %v1599_v18 }
 0x198   : > { %1279 = vrot.lane.b32.xlu2 %v2482_v19, %s2104_s9 }
 0x199   : > { %1271 = vrot.lane.b32.xlu1 %v3509_v6, %s2104_s9 }
 0x19a   : > { %1201 = vrot.lane.b32.xlu0 %v2583_v24, %s2103_s8  ;;  %v1251_v6 = vpop.permute.xlu2 %1250 }
 0x19b   : > { %v1233_v34 = vpop.permute.xlu1 %1232 }
 0x19c   : > { %v1327_v45 = vpop.permute.xlu0 %1326  ;;  %v1517_v9 = vsel %vm1513_vm12, %v1484_v4, %v1233_v34 }
 0x19d   : > { %v1607_v16 = vsel %vm1579_vm14, %v1574_v13, %v1327_v45 }
 0x19e   : > { %1933 = vmatmul.msk.bf16.gmra.mxu3 %vm1636_vm15, %v1607_v16 }
 0x1a1   : > { %1314 = vrot.lane.b32.xlu1 %v2659_v48, %s2106_s11 }
 0x1a2   : > { %1244 = vrot.lane.b32.xlu0 %v2784_v50, %s2105_s10  ;;  %v1459_v50 = vsel %vm1447_vm10, %v2988_v27, %v1171_v46  ;;  %v1294_v41 = vpop.permute.xlu2 %1293  ;;  %v1477_v27 = vsel %vm1447_vm10, %v3043_v33, %v1189_v20  ;;  %s1808_s10 = scalar_lea.hbm %s3432_s3, %s1943_s7 }
 0x1a3   : > { %v1276_v19 = vpop.permute.xlu1 %1275  ;;  %s1811_s18 = sshll.u32 %s1808_s10, 4  ;;  %s1812_s18 = int_to_ptr.hbm [resolvable:$true] %s1811_s18 }
 0x1a4   : > { %v1206_v24 = vpop.permute.xlu0 %1205  ;;  %s2033_s19 = sshra.s32 %s1812_s18, 4  ;;  %s2034_s19 = int_to_ptr.hbm [resolvable:$true] %s2033_s19 }
 0x1a5   : > { %v1492_v36 = vsel %vm1480_vm11, %v1459_v50, %v1206_v24  ;;  %s2035_s21 = scalar_lea.hbm %s2034_s19, 256  ;;  %p2040_p1 = scmp.lt.s32.totalorder %s2034_s19, %s3432_s3 }
 0x1a6   : > { %p2036_p12 = scmp.ne.s32.totalorder %s2034_s19, %s2035_s21  ;;  %p2041_p2 = scmp.lt.s32.totalorder %s2039_s27, %s2035_s21 }
 0x1a8   : > { %p2037_p13 = pnand %p2036_p12, %p2168_p4  ;;  %p2042_p3 = por %p2041_p2, %p2040_p1 }
 0x1aa   : > { %1306 = vrot.lane.b32.xlu0 %v2654_v12, %s2106_s11  ;;  %v1525_v12 = vsel %vm1513_vm12, %v1492_v36, %v1241_v40  ;;  %v1165_v35 = vpop.permute.xlu2 %1164  ;;  %s1809_s11 = sshll.u32 %s3295_s6, 4  ;;  %p2038_p0 = pneg %p2037_p13  ;;  %s1810_s11 = int_to_ptr.vmem [resolvable:$true] %s1809_s11 }
 0x1ab   : > { %v1181_v55 = vpop.permute.xlu1 %1180  ;;  %v1558_v0 = vsel %vm1546_vm13, %v1525_v12, %v1276_v19  ;;  %v1453_v7 = vsel %vm1447_vm10, %v2974_v53, %v1165_v35  ;;  %v3288_v53 = vld [vmem:[%s3431_s2] ss:$0 sm:$0xff] }
 0x1ac   : > { %v1268_v57 = vpop.permute.xlu0 %1267  ;;  %v1469_v61 = vsel %vm1447_vm10, %v3047_v26, %v1181_v55  ;;  %p2043_p5 = pnand %p2042_p3, %p2038_p0 }
 0x1ad   : > { %v1550_v23 = vsel %vm1546_vm13, %v1517_v9, %v1268_v57 }
 0x1ae   : > { %v1583_v48 = vsel %vm1579_vm14, %v1550_v23, %v1303_v58 }
 0x1af   : > { %1921 = vmatmul.msk.bf16.gmra.mxu0 %vm1636_vm15, %v1583_v48 }
 0x1b2   : > { %v1208_v10 = vpop.permute.xlu2 %1207 }
 0x1b3   : > { %v1224_v28 = vpop.permute.xlu1 %1223 }
 0x1b4   : > { %v1311_v43 = vpop.permute.xlu0 %1310  ;;  %v1510_v11 = vsel %vm1480_vm11, %v1477_v27, %v1224_v28 }
 0x1b5   : > { %v1591_v5 = vsel %vm1579_vm14, %v1558_v0, %v1311_v43 }
 0x1b6   : > { %1925 = vmatmul.msk.bf16.gmra.mxu1 %vm1636_vm15, %v1591_v5 }
 0x1ba   : > { %v1270_v40 = vpop.permute.xlu2 %1269 }
 0x1bb   : > { %v1286_v3 = vpop.permute.xlu1 %1285 }
 0x1bc   : > { %v1216_v30 = vpop.permute.xlu0 %1215 }
 0x1bd   : > { %v1502_v39 = vsel %vm1480_vm11, %v1469_v61, %v1216_v30 }
 0x1be   : > { %v1535_v33 = vsel %vm1513_vm12, %v1502_v39, %v1251_v6 }
 0x1bf   : > { %v1568_v17 = vsel %vm1546_vm13, %v1535_v33, %v1286_v3 }
 0x1c2   : > { %v1313_v54 = vpop.permute.xlu2 %1312 }
 0x1c3   : > { %v1329_v60 = vpop.permute.xlu1 %1328 }
 0x1c4   : > { %v1259_v52 = vpop.permute.xlu0 %1258 }
 0x1c5   : > { %v1543_v1 = vsel %vm1513_vm12, %v1510_v11, %v1259_v52 }
 0x1c6   : > { %v1576_v51 = vsel %vm1546_vm13, %v1543_v1, %v1294_v41 }
 0x1c7   : > { %v1609_v31 = vsel %vm1579_vm14, %v1576_v51, %v1329_v60 }
 0x1c8   : > { %1934 = vmatmul.msk.bf16.gmra.mxu3 %vm1636_vm15, %v1609_v31 }
 0x1ca   : > { %v1218_v25 = vpop.permute.xlu2 %1217 }
 0x1cb   : > { %v1200_v15 = vpop.permute.xlu1 %1199 }
 0x1cc   : > { %v1321_v56 = vpop.permute.xlu0 %1320  ;;  %v1486_v62 = vsel %vm1480_vm11, %v1453_v7, %v1200_v15 }
 0x1cd   : > { %v1601_v21 = vsel %vm1579_vm14, %v1568_v17, %v1321_v56 }
 0x1ce   : > { %1930 = vmatmul.msk.bf16.gmra.mxu2 %vm1636_vm15, %v1601_v21 }
 0x1d2   : > { %v1261_v4 = vpop.permute.xlu2 %1260 }
 0x1d3   : > { %v1243_v26 = vpop.permute.xlu1 %1242 }
 0x1d4   : > { %v1173_v22 = vpop.permute.xlu0 %1172 }
 0x1d5   : > { %v1461_v37 = vsel %vm1447_vm10, %v2938_v47, %v1173_v22 }
 0x1d6   : > { %v1494_v2 = vsel %vm1480_vm11, %v1461_v37, %v1208_v10 }
 0x1d7   : > { %v1527_v14 = vsel %vm1513_vm12, %v1494_v2, %v1243_v26 }
 0x1da   : > { %v1323_v36 = vpop.permute.xlu2 %1322 }
 0x1db   : > { %v1305_v29 = vpop.permute.xlu1 %1304 }
 0x1dc   : > { %v1235_v49 = vpop.permute.xlu0 %1234 }
 0x1dd   : > { %v1519_v58 = vsel %vm1513_vm12, %v1486_v62, %v1235_v49 }
 0x1de   : > { %v1552_v42 = vsel %vm1546_vm13, %v1519_v58, %v1270_v40 }
 0x1df   : > { %v1585_v46 = vsel %vm1579_vm14, %v1552_v42, %v1305_v29 }
 0x1e0   : > { %1922 = vmatmul.msk.bf16.gmra.mxu0 %vm1636_vm15, %v1585_v46 }
 0x1e2   : > { %v1175_v11 = vpop.permute.xlu2 %1174 }
 0x1e3   : > { %v1722_v18 = vpop.f32.mrf.mxu2  ;;  %v1191_v63 = vpop.permute.xlu1 %1190  ;;  %v1463_v56 = vsel %vm1447_vm10, %v3028_v8, %v1175_v11 }
 0x1e4   : > { %v1278_v59 = vpop.permute.xlu0 %1277  ;;  %v1723_v34 = vadd.f32 %v3288_v53, %v1722_v18 }
 0x1e5   : > { %v1560_v47 = vsel %vm1546_vm13, %v1527_v14, %v1278_v59 }
 0x1e6   : > { %v1593_v13 = vsel %vm1579_vm14, %v1560_v47, %v1313_v54  ;;  %1778 = vst [vmem:[%s3295_s6 + $0x80] sm:$0xff] %v1723_v34 }
 0x1e7   : > { %1926 = vmatmul.msk.bf16.gmra.mxu1 %vm1636_vm15, %v1593_v13 }
 0x1ea   : > { %v1742_v20 = vpop.f32.mrf.mxu3 }
 0x1eb   : > { %v1743_v45 = vadd.f32 %v3288_v53, %v1742_v20  ;;  %v1724_v16 = vpop.f32.mrf.mxu2  ;;  %v1253_v19 = vpop.permute.xlu1 %1252 }
 0x1ec   : > { %v1183_v24 = vpop.permute.xlu0 %1182  ;;  %v1725_v6 = vadd.f32 %v3288_v53, %v1724_v16 }
 0x1ed   : > { %1786 = vst [vmem:[%s3295_s6 + $0xc0] sm:$0xff] %v1743_v45  ;;  %v1471_v41 = vsel %vm1447_vm10, %v3024_v44, %v1183_v24  ;;  %v1479_v44 = vsel %vm1447_vm10, %v2985_v32, %v1191_v63  ;;  %v1237_v32 = vpop.permute.xlu2 %1236 }
 0x1ee   : > { %1779 = vst [vmem:[%s3295_s6 + $0x88] sm:$0xff] %v1725_v6  ;;  %v1504_v12 = vsel %vm1480_vm11, %v1471_v41, %v1218_v25 }
 0x1ef   : > { %v1537_v0 = vsel %vm1513_vm12, %v1504_v12, %v1253_v19 }
 0x1f2   : > { %v1744_v55 = vpop.f32.mrf.mxu3 }
 0x1f3   : > { %v1745_v9 = vadd.f32 %v3288_v53, %v1744_v55  ;;  %v1296_v57 = vpop.permute.xlu1 %1295 }
 0x1f4   : > { %v1226_v23 = vpop.permute.xlu0 %1225 }
 0x1f5   : > { %1787 = vst [vmem:[%s3295_s6 + $0xc8] sm:$0xff] %v1745_v9  ;;  %v1682_v48 = vpop.f32.mrf.mxu0  ;;  %v1512_v10 = vsel %vm1480_vm11, %v1479_v44, %v1226_v23  ;;  %v1280_v21 = vpop.permute.xlu2 %1279 }
 0x1f6   : > { %v1683_v50 = vadd.f32 %v3288_v53, %v1682_v48  ;;  %v1545_v52 = vsel %vm1513_vm12, %v1512_v10, %v1261_v4 }
 0x1f7   : > { %v1578_v51 = vsel %vm1546_vm13, %v1545_v52, %v1296_v57 }
 0x1f8   : > { %1762 = vst [vmem:[%s3295_s6] sm:$0xff] %v1683_v50 }
 0x1fb   : > { %v1167_v28 = vpop.permute.xlu1 %1166 }
 0x1fc   : > { %v1702_v43 = vpop.f32.mrf.mxu1  ;;  %v1288_v5 = vpop.permute.xlu0 %1287  ;;  %v1455_v29 = vsel %vm1447_vm10, %v2922_v38, %v1167_v28 }
 0x1fd   : > { %v1703_v35 = vadd.f32 %v3288_v53, %v1702_v43  ;;  %v1570_v3 = vsel %vm1546_vm13, %v1537_v0, %v1288_v5  ;;  %v1684_v30 = vpop.f32.mrf.mxu0 }
 0x1fe   : > { %v1603_v27 = vsel %vm1579_vm14, %v1570_v3, %v1323_v36  ;;  %v1685_v60 = vadd.f32 %v3288_v53, %v1684_v30 }
 0x1ff   : > { %1770 = vst [vmem:[%s3295_s6 + $0x40] sm:$0xff] %v1703_v35  ;;  %1931 = vmatmul.msk.bf16.gmra.mxu2 %vm1636_vm15, %v1603_v27 }
 0x200   : > { %1763 = vst [vmem:[%s3295_s6 + $0x8] sm:$0xff] %v1685_v60 }
 0x203   : > { %v1210_v1 = vpop.permute.xlu1 %1209 }
 0x204   : > { %v1704_v61 = vpop.f32.mrf.mxu1  ;;  %v1331_v31 = vpop.permute.xlu0 %1330  ;;  %v1496_v40 = vsel %vm1480_vm11, %v1463_v56, %v1210_v1 }
 0x205   : > { %v1705_v39 = vadd.f32 %v3288_v53, %v1704_v61  ;;  %v1611_v33 = vsel %vm1579_vm14, %v1578_v51, %v1331_v31 }
 0x206   : > { %1935 = vmatmul.msk.bf16.gmra.mxu3 %vm1636_vm15, %v1611_v33 }
 0x207   : > { %1771 = vst [vmem:[%s3295_s6 + $0x48] sm:$0xff] %v1705_v39 }
 0x20b   : > { %v1272_v15 = vpop.permute.xlu1 %1271 }
 0x20c   : > { %v1202_v17 = vpop.permute.xlu0 %1201 }
 0x20d   : > { %v1488_v49 = vsel %vm1480_vm11, %v1455_v29, %v1202_v17 }
 0x20e   : > { %v1521_v58 = vsel %vm1513_vm12, %v1488_v49, %v1237_v32 }
 0x20f   : > { %v1554_v46 = vsel %vm1546_vm13, %v1521_v58, %v1272_v15 }
 0x213   : > { %v1315_v22 = vpop.permute.xlu1 %1314 }
 0x214   : > { %v1245_v26 = vpop.permute.xlu0 %1244 }
 0x215   : > { %v1529_v54 = vsel %vm1513_vm12, %v1496_v40, %v1245_v26 }
 0x216   : > { %v1562_v7 = vsel %vm1546_vm13, %v1529_v54, %v1280_v21 }
 0x217   : > { %v1595_v62 = vsel %vm1579_vm14, %v1562_v7, %v1315_v22 }
 0x218   : > { %1927 = vmatmul.msk.bf16.gmra.mxu1 %vm1636_vm15, %v1595_v62 }
 0x21a   : > { %v1727_v8 = vpop.f32.mrf.mxu2 }
 0x21b   : > { %v1728_v42 = vadd.f32 %v3288_v53, %v1727_v8 }
 0x21c   : > { %v1307_v37 = vpop.permute.xlu0 %1306 }
 0x21d   : > { %1780 = vst [vmem:[%s3295_s6 + $0x90] sm:$0xff] %v1728_v42  ;;  %v1587_v38 = vsel %vm1579_vm14, %v1554_v46, %v1307_v37 }
 0x21e   : > { %1923 = vmatmul.msk.bf16.gmra.mxu0 %vm1636_vm15, %v1587_v38 }
 0x221   : > { %v1747_v25 = vpop.f32.mrf.mxu3 }
 0x222   : > { %v1748_v2 = vadd.f32 %v3288_v53, %v1747_v25  ;;  %v1729_v18 = vpop.f32.mrf.mxu2 }
 0x223   : > { %v1730_v63 = vadd.f32 %v3288_v53, %v1729_v18 }
 0x224   : > { %1788 = vst [vmem:[%s3295_s6 + $0xd0] sm:$0xff] %v1748_v2 }
 0x225   : > { %1781 = vst [vmem:[%s3295_s6 + $0x98] sm:$0xff] %v1730_v63 }
 0x229   : > { %v1749_v14 = vpop.f32.mrf.mxu3 }
 0x22a   : > { %v1750_v59 = vadd.f32 %v3288_v53, %v1749_v14 }
 0x22c   : > { %1789 = vst [vmem:[%s3295_s6 + $0xd8] sm:$0xff] %v1750_v59  ;;  %v1687_v34 = vpop.f32.mrf.mxu0 }
 0x22d   : > { %v1688_v47 = vadd.f32 %v3288_v53, %v1687_v34 }
 0x22f   : > { %1764 = vst [vmem:[%s3295_s6 + $0x10] sm:$0xff] %v1688_v47 }
 0x233   : > { %v1707_v13 = vpop.f32.mrf.mxu1 }
 0x234   : > { %v1708_v20 = vadd.f32 %v3288_v53, %v1707_v13  ;;  %v1689_v45 = vpop.f32.mrf.mxu0 }
 0x235   : > { %v1690_v16 = vadd.f32 %v3288_v53, %v1689_v45 }
 0x236   : > { %1772 = vst [vmem:[%s3295_s6 + $0x50] sm:$0xff] %v1708_v20 }
 0x237   : > { %1765 = vst [vmem:[%s3295_s6 + $0x18] sm:$0xff] %v1690_v16 }
 0x23b   : > { %v1709_v19 = vpop.f32.mrf.mxu1 }
 0x23c   : > { %v1710_v24 = vadd.f32 %v3288_v53, %v1709_v19 }
 0x23e   : > { %1773 = vst [vmem:[%s3295_s6 + $0x58] sm:$0xff] %v1710_v24 }
 0x24b   : > { %v1752_v6 = vpop.f32.mrf.mxu3 }
 0x24c   : > { %v1753_v4 = vadd.f32 %v3288_v53, %v1752_v6 }
 0x24e   : > { %1790 = vst [vmem:[%s3295_s6 + $0xe0] sm:$0xff] %v1753_v4 }
 0x251   : > { %v1732_v55 = vpop.f32.mrf.mxu2 }
 0x252   : > { %v1733_v9 = vadd.f32 %v3288_v53, %v1732_v55 }
 0x253   : > { %v1754_v57 = vpop.f32.mrf.mxu3 }
 0x254   : > { %1782 = vst [vmem:[%s3295_s6 + $0xa0] sm:$0xff] %v1733_v9  ;;  %v1755_v23 = vadd.f32 %v3288_v53, %v1754_v57 }
 0x256   : > { %1791 = vst [vmem:[%s3295_s6 + $0xe8] sm:$0xff] %v1755_v23 }
 0x259   : > { %v1734_v48 = vpop.f32.mrf.mxu2 }
 0x25a   : > { %v1735_v50 = vadd.f32 %v3288_v53, %v1734_v48 }
 0x25c   : > { %1783 = vst [vmem:[%s3295_s6 + $0xa8] sm:$0xff] %v1735_v50 }
 0x25d   : > { %v1692_v36 = vpop.f32.mrf.mxu0 }
 0x25e   : > { %v1693_v41 = vadd.f32 %v3288_v53, %v1692_v36 }
 0x260   : > { %1766 = vst [vmem:[%s3295_s6 + $0x20] sm:$0xff] %v1693_v41 }
 0x264   : > { %v1712_v12 = vpop.f32.mrf.mxu1 }
 0x265   : > { %v1713_v28 = vadd.f32 %v3288_v53, %v1712_v12  ;;  %v1694_v0 = vpop.f32.mrf.mxu0 }
 0x266   : > { %v1695_v43 = vadd.f32 %v3288_v53, %v1694_v0 }
 0x267   : > { %1774 = vst [vmem:[%s3295_s6 + $0x60] sm:$0xff] %v1713_v28 }
 0x268   : > { %1767 = vst [vmem:[%s3295_s6 + $0x28] sm:$0xff] %v1695_v43 }
 0x26c   : > { %v1714_v5 = vpop.f32.mrf.mxu1 }
 0x26d   : > { %v1715_v35 = vadd.f32 %v3288_v53, %v1714_v5 }
 0x26f   : > { %1775 = vst [vmem:[%s3295_s6 + $0x68] sm:$0xff] %v1715_v35 }
 0x282   : > { %v1737_v3 = vpop.f32.mrf.mxu2 }
 0x283   : > { %v1738_v30 = vadd.f32 %v3288_v53, %v1737_v3 }
 0x285   : > { %1784 = vst [vmem:[%s3295_s6 + $0xb0] sm:$0xff] %v1738_v30 }
 0x289   : > { %v1757_v27 = vpop.f32.mrf.mxu3 }
 0x28a   : > { %v1758_v60 = vadd.f32 %v3288_v53, %v1757_v27  ;;  %v1739_v44 = vpop.f32.mrf.mxu2 }
 0x28b   : > { %v1740_v10 = vadd.f32 %v3288_v53, %v1739_v44 }
 0x28c   : > { %1792 = vst [vmem:[%s3295_s6 + $0xf0] sm:$0xff] %v1758_v60 }
 0x28d   : > { %1785 = vst [vmem:[%s3295_s6 + $0xb8] sm:$0xff] %v1740_v10 }
 0x291   : > { %v1759_v11 = vpop.f32.mrf.mxu3 }
 0x292   : > { %v1760_v52 = vadd.f32 %v3288_v53, %v1759_v11 }
 0x294   : > { %1793 = vst [vmem:[%s3295_s6 + $0xf8] sm:$0xff] %v1760_v52 }
 0x295   : > { %v1717_v1 = vpop.f32.mrf.mxu1 }
 0x296   : > { %v1718_v51 = vadd.f32 %v3288_v53, %v1717_v1 }
 0x298   : > { %1776 = vst [vmem:[%s3295_s6 + $0x70] sm:$0xff] %v1718_v51 }
 0x29b   : > { %v1697_v61 = vpop.f32.mrf.mxu0 }
 0x29c   : > { %v1698_v31 = vadd.f32 %v3288_v53, %v1697_v61 }
 0x29d   : > { %v1719_v39 = vpop.f32.mrf.mxu1 }
 0x29e   : > { %1768 = vst [vmem:[%s3295_s6 + $0x30] sm:$0xff] %v1698_v31  ;;  %v1720_v33 = vadd.f32 %v3288_v53, %v1719_v39 }
 0x2a0   : > { %1777 = vst [vmem:[%s3295_s6 + $0x78] sm:$0xff] %v1720_v33 }
 0x2a3   : > { %v1699_v32 = vpop.f32.mrf.mxu0 }
 0x2a4   : > { %v1700_v15 = vadd.f32 %v3288_v53, %v1699_v32 }
 0x2a6   : > { %1769 = vst [vmem:[%s3295_s6 + $0x38] sm:$0xff] %v1700_v15 }
 0x2a7   : > { %2046 = shalt.err (!%p2043_p5)
}
 0x2a8   : > { %s2107_s28 = smov 128  }
 0x2a9   : > { %1954 = dma.vmem_to_hbm [thread:$0]  (%p2168_p4), %s1810_s11, 4096, %s1812_s18, %s1795_s15, %s2107_s28, %s2107_s28, %s2100_s5  }
 0x2aa PF: > { %p1960_p6 = scmp.ge.s32.totalorder %s2097_s17, 2  ;;  %s1826_s4 = sand.u32 1, %s2077_s12  }
 0x2ab   : > { %s1827_s6 = scalar_lea.sflag [#allocation3], %s1826_s4 }
 0x2ac   : > { %p1957_p7 = pnand %p1960_p6, %p2175_p8 }
 0x2ae   : > { %p1958_p9 = pneg %p1957_p7 }
 0x2b0   : > { %2072 = dma.done.wait (%p1958_p9), %s1827_s6, 4096  }
 0x2b1   : > { %2074 = vsyncadd (%p1958_p9), %s1827_s6, 4294963200  ;;  %s16_s17 = sadd.s32 1, %s2097_s17   ;;  %s3517_s12 = smov %s2081_s13 }
 0x2b2   : > { %p13_p10 = scmp.ge.s32.totalorder %s16_s17, 4   ;;  %s3518_s13 = smov %s2085_s14 }
 0x2b3   : > { %s3519_s14 = smov %s2181_s25  ;;  %s3520_s15 = smov %s2093_s16 }
 0x2b4   : > { %s3521_s16 = smov %s3523_s20  ;;  %15 = sbr.rel (!%p13_p10) target bundleno = 4 (0x4), region = 68 }
 0x2b9   :  { %1833 = vsyncpa [#allocation3], 1 }
 0x2ba   :  { %1835 = vsyncpa [#allocation3 + $0x1], 1 }

</bundles_post_ra>
